<compile_context>
chip_gen: v7x
topology: tpu7x:2x2x1
jax: 0.10.0
libtpu: 0.0.40
codegen_flags: <defaults>
</compile_context>

<pallas_src>
import functools

import jax
import jax.numpy as jnp
from jax.experimental import pallas as pl
from jax.experimental.pallas import tpu as pltpu


def _mstgcn_block_kernel(x_ref, a_ref, wg_ref, bg_ref, wt_ref, bt_ref,
                         wr_ref, br_ref, gamma_ref, beta_ref, o_ref,
                         *, batch, max_view, eps):
    # Shapes:
    #   x_ref  : (T*B, N, F_in)   row index = t*B + b
    #   a_ref  : (N, N)
    #   wg_ref : (K, F_in, C)     bg_ref: (1, C)
    #   wt_ref : (3, C, O)        bt_ref: (1, O)
    #   wr_ref : (F_in, O)        br_ref: (1, O)
    #   gamma_ref / beta_ref : (1, O)
    #   o_ref  : (T*B, N, O)
    tb, n, _ = x_ref.shape
    c = wg_ref.shape[-1]

    x = x_ref[...]                                               # (TB, N, F)

    # ---- GraphConv: conv_ker = K-hop adjacency diffusion, then Linear, then ReLU.
    # h = relu( sum_k (A^k x) @ Wg[k] + bg ), all as batched MXU einsums.
    a_b = jnp.broadcast_to(a_ref[...][None, :, :], (tb, n, n))   # hoisted once
    v = x
    h = jnp.einsum('bnf,fc->bnc', v, wg_ref[0],
                   preferred_element_type=jnp.float32)
    for k in range(1, max_view):                                 # K is tiny & static
        v = jnp.einsum('bnm,bmf->bnf', a_b, v,
                       preferred_element_type=jnp.float32)
        h = h + jnp.einsum('bnf,fc->bnc', v, wg_ref[k],
                           preferred_element_type=jnp.float32)
    h = jax.nn.relu(h + bg_ref[...])                             # (TB, N, C)

    # ---- Temporal (1,3) conv, padding 1, stride 1: three time-shifted batched
    # matmuls.  Row index is t*B + b, so one timestep == `batch` rows.
    zpad = jnp.zeros((batch, n, c), jnp.float32)
    h_prev = jnp.concatenate([zpad, h[:tb - batch]], axis=0)     # h[t-1] (zero at t=0)
    h_next = jnp.concatenate([h[batch:], zpad], axis=0)          # h[t+1] (zero at t=T-1)
    y = (jnp.einsum('bnc,co->bno', h_prev, wt_ref[0],
                    preferred_element_type=jnp.float32)
         + jnp.einsum('bnc,co->bno', h, wt_ref[1],
                      preferred_element_type=jnp.float32)
         + jnp.einsum('bnc,co->bno', h_next, wt_ref[2],
                      preferred_element_type=jnp.float32)
         + bt_ref[...])                                          # (TB, N, O)

    # ---- Residual 1x1 conv on the raw input.
    r = jnp.einsum('bnf,fo->bno', x, wr_ref[...],
                   preferred_element_type=jnp.float32) + br_ref[...]

    # ---- Add + ReLU + LayerNorm over the time-filter axis (lane reductions -> XLU,
    # rsqrt -> EUP), then one coalesced store.
    z = jax.nn.relu(y + r)
    mu = jnp.mean(z, axis=-1, keepdims=True)
    zc = z - mu
    var = jnp.mean(zc * zc, axis=-1, keepdims=True)
    inv = jax.lax.rsqrt(var + eps)
    o_ref[...] = (zc * inv * gamma_ref[...] + beta_ref[...]).astype(o_ref.dtype)


def mstgcn_block_forward(x, a, wg, bg, wt, bt, wr, br, gamma, beta,
                         *, max_view, eps=1e-5):
    """Fused MSTGCNBlock forward (time_strides = 1 path).

    x : (T, B, N, F_in) node features      a : (N, N) adjacency for conv_ker
    wg: (K, F_in, C) GraphConv weight (per view, (in, out) layout), bg: (C,)
    wt: (3, C, O) temporal (1,3) conv weight (tap-major, (in, out)), bt: (O,)
    wr: (F_in, O) residual 1x1 conv weight, br: (O,)
    gamma, beta: (O,) LayerNorm affine
    returns (T, B, N, O), matching the PyTorch module's output layout.
    """
    t_steps, batch, n, f_in = x.shape
    o = wt.shape[-1]
    tb = t_steps * batch

    x2 = x.reshape(tb, n, f_in)              # free wrapper-side reshape
    row = lambda v: v.reshape(1, -1)         # biases / affine as 2-D (1, E) rows

    def full_spec(shape):
        nd = len(shape)

        def idx(i):
            return (0,) * nd

        return pl.BlockSpec(shape, idx)

    kernel = functools.partial(_mstgcn_block_kernel, batch=batch,
                               max_view=max_view, eps=eps)

    args = (x2, a, wg, row(bg), wt, row(bt), wr, row(br), row(gamma), row(beta))

    out = pl.pallas_call(
        kernel,
        out_shape=jax.ShapeDtypeStruct((tb, n, o), x.dtype),
        grid=(1,),                            # launch-bound: one step, no megacore split
        in_specs=[full_spec(v.shape) for v in args],
        out_specs=pl.BlockSpec((tb, n, o), lambda i: (0, 0, 0)),
        compiler_params=pltpu.CompilerParams(
            dimension_semantics=("arbitrary",),
        ),
    )(*args)
    return out.reshape(t_steps, batch, n, o)


def _reference(x, a, wg, bg, wt, bt, wr, br, gamma, beta, *, max_view, eps=1e-5):
    """Pure-JAX mirror of MSTGCNBlock.forward with the same conv_ker instantiation."""
    t_steps = x.shape[0]
    # GraphConv: conv_ker stacks K adjacency-diffused views, then a Linear.
    views = [x]
    v = x
    for _ in range(1, max_view):
        v = jnp.einsum('nm,tbmf->tbnf', a, v)
        views.append(v)
    xg = jnp.concatenate(views, axis=-1)                      # (T, B, N, K*F)
    wg_flat = wg.reshape(-1, wg.shape[-1])                    # (K*F, C), view-major rows
    h = jax.nn.relu(jnp.einsum('tbnf,fc->tbnc', xg, wg_flat) + bg)
    # Temporal (1,3) conv, padding (0,1), stride 1.
    hp = jnp.pad(h, ((1, 1), (0, 0), (0, 0), (0, 0)))
    y = sum(jnp.einsum('tbnc,co->tbno', hp[j:j + t_steps], wt[j]) for j in range(3)) + bt
    # Residual 1x1 conv.
    r = jnp.einsum('tbnf,fo->tbno', x, wr) + br
    z = jax.nn.relu(y + r)
    mu = z.mean(-1, keepdims=True)
    var = ((z - mu) ** 2).mean(-1, keepdims=True)
    return (z - mu) / jnp.sqrt(var + eps) * gamma + beta


if __name__ == "__main__":
    key = jax.random.PRNGKey(0)
    T, B, N, F_IN = 8, 2, 16, 8      # (seq, batch, nodes, in_channels)
    K = 3                            # max_view (Chebyshev order)
    C = 32                           # nb_chev_filter
    O = 32                           # nb_time_filter
    # time_strides = 1 (stride-1 path implemented)

    keys = jax.random.split(key, 8)
    x = jax.random.normal(keys[0], (T, B, N, F_IN), dtype=jnp.float32)

    # Row-normalized symmetric adjacency used by the graph diffusion (conv_ker).
    a_raw = jax.random.uniform(keys[1], (N, N), dtype=jnp.float32)
    a_sym = (a_raw + a_raw.T) * 0.5
    a = a_sym / jnp.sum(a_sym, axis=-1, keepdims=True)

    def unif(k, shape, fan_in):
        bound = 1.0 / (fan_in ** 0.5)
        return jax.random.uniform(k, shape, minval=-bound, maxval=bound,
                                  dtype=jnp.float32)

    wg = unif(keys[2], (K, F_IN, C), K * F_IN)
    bg = unif(keys[3], (C,), K * F_IN)
    wt = unif(keys[4], (3, C, O), 3 * C)
    bt = unif(keys[5], (O,), 3 * C)
    wr = unif(keys[6], (F_IN, O), F_IN)
    br = unif(keys[7], (O,), F_IN)
    gamma = jnp.ones((O,), jnp.float32)
    beta = jnp.zeros((O,), jnp.float32)

    out = mstgcn_block_forward(x, a, wg, bg, wt, bt, wr, br, gamma, beta,
                               max_view=K)
    out = jax.block_until_ready(out)

    ref = _reference(x, a, wg, bg, wt, bt, wr, br, gamma, beta, max_view=K)
    assert out.shape == ref.shape == (T, B, N, O), (out.shape, ref.shape)
    assert jnp.allclose(out, ref, atol=1e-4, rtol=1e-4), \
        float(jnp.max(jnp.abs(out - ref)))

    print("KERNEL_OK")
</pallas_src>

<mosaic_0001>
module attributes {stable_mosaic.version = 11 : i64} {
  func.func @_mstgcn_block_kernel(%arg0: i32, %arg1: memref<16x16x8xf32, #tpu.memory_space<vmem>>, %arg2: memref<16x16xf32, #tpu.memory_space<vmem>>, %arg3: memref<3x8x32xf32, #tpu.memory_space<vmem>>, %arg4: memref<1x32xf32, #tpu.memory_space<vmem>>, %arg5: memref<3x32x32xf32, #tpu.memory_space<vmem>>, %arg6: memref<1x32xf32, #tpu.memory_space<vmem>>, %arg7: memref<8x32xf32, #tpu.memory_space<vmem>>, %arg8: memref<1x32xf32, #tpu.memory_space<vmem>>, %arg9: memref<1x32xf32, #tpu.memory_space<vmem>>, %arg10: memref<1x32xf32, #tpu.memory_space<vmem>>, %arg11: memref<16x16x32xf32, #tpu.memory_space<vmem>>) attributes {dimension_semantics = [#tpu.dimension_semantics<arbitrary>], iteration_bounds = array<i64: 1>, scalar_prefetch = 0 : i64, scratch_operands = 0 : i64, tpu.core_type = #tpu.core_type<tc>, window_params = [{pipeline_mode = #tpu.pipeline_mode<synchronous>, transform_indices = @transform_0, window_bounds = array<i64: 16, 16, 8>}, {pipeline_mode = #tpu.pipeline_mode<synchronous>, transform_indices = @transform_1, window_bounds = array<i64: 16, 16>}, {pipeline_mode = #tpu.pipeline_mode<synchronous>, transform_indices = @transform_2, window_bounds = array<i64: 3, 8, 32>}, {pipeline_mode = #tpu.pipeline_mode<synchronous>, transform_indices = @transform_3, window_bounds = array<i64: 1, 32>}, {pipeline_mode = #tpu.pipeline_mode<synchronous>, transform_indices = @transform_4, window_bounds = array<i64: 3, 32, 32>}, {pipeline_mode = #tpu.pipeline_mode<synchronous>, transform_indices = @transform_5, window_bounds = array<i64: 1, 32>}, {pipeline_mode = #tpu.pipeline_mode<synchronous>, transform_indices = @transform_6, window_bounds = array<i64: 8, 32>}, {pipeline_mode = #tpu.pipeline_mode<synchronous>, transform_indices = @transform_7, window_bounds = array<i64: 1, 32>}, {pipeline_mode = #tpu.pipeline_mode<synchronous>, transform_indices = @transform_8, window_bounds = array<i64: 1, 32>}, {pipeline_mode = #tpu.pipeline_mode<synchronous>, transform_indices = @transform_9, window_bounds = array<i64: 1, 32>}, {pipeline_mode = #tpu.pipeline_mode<synchronous>, transform_indices = @transform_10, window_bounds = array<i64: 16, 16, 32>}]} {
    %c0 = arith.constant 0 : index
    %c0_0 = arith.constant 0 : index
    %c0_1 = arith.constant 0 : index
    %0 = vector.load %arg1[%c0, %c0_0, %c0_1] : memref<16x16x8xf32, #tpu.memory_space<vmem>>, vector<16x16x8xf32>
    %c0_2 = arith.constant 0 : index
    %c0_3 = arith.constant 0 : index
    %1 = vector.load %arg2[%c0_2, %c0_3] : memref<16x16xf32, #tpu.memory_space<vmem>>, vector<16x16xf32>
    %2 = vector.shape_cast %1 : vector<16x16xf32> to vector<1x16x16xf32>
    %3 = vector.shape_cast %2 : vector<1x16x16xf32> to vector<1x16x16xf32>
    %4 = vector.broadcast %3 : vector<1x16x16xf32> to vector<16x16x16xf32>
    %c0_4 = arith.constant 0 : index
    %c0_5 = arith.constant 0 : index
    %c0_6 = arith.constant 0 : index
    %5 = vector.load %arg3[%c0_4, %c0_5, %c0_6] : memref<3x8x32xf32, #tpu.memory_space<vmem>>, vector<1x8x32xf32>
    %6 = vector.shape_cast %5 : vector<1x8x32xf32> to vector<8x32xf32>
    "tpu.trace_start"() <{level = 10 : i32, message = "bnf,fc->bnc"}> : () -> ()
    %cst = arith.constant dense<0.000000e+00> : vector<16x16x32xf32>
    %7 = tpu.matmul %0, %6, %cst {dimension_numbers = #tpu.dot_dimension_numbers<[2], [0], [0, 1], [1], [0, 0, 0, 1, 1, 1], [], []>} : vector<16x16x8xf32>, vector<8x32xf32>, vector<16x16x32xf32> -> vector<16x16x32xf32>
    "tpu.trace_stop"() : () -> ()
    "tpu.trace_start"() <{level = 10 : i32, message = "bnm,bmf->bnf"}> : () -> ()
    %cst_7 = arith.constant dense<0.000000e+00> : vector<16x16x8xf32>
    %8 = tpu.matmul %4, %0, %cst_7 {dimension_numbers = #tpu.dot_dimension_numbers<[2], [1], [1], [2], [0, 0, 0, 1, 1, 2], [0], [0]>} : vector<16x16x16xf32>, vector<16x16x8xf32>, vector<16x16x8xf32> -> vector<16x16x8xf32>
    "tpu.trace_stop"() : () -> ()
    %c1 = arith.constant 1 : index
    %c0_8 = arith.constant 0 : index
    %c0_9 = arith.constant 0 : index
    %9 = vector.load %arg3[%c1, %c0_8, %c0_9] : memref<3x8x32xf32, #tpu.memory_space<vmem>>, vector<1x8x32xf32>
    %10 = vector.shape_cast %9 : vector<1x8x32xf32> to vector<8x32xf32>
    "tpu.trace_start"() <{level = 10 : i32, message = "bnf,fc->bnc"}> : () -> ()
    %cst_10 = arith.constant dense<0.000000e+00> : vector<16x16x32xf32>
    %11 = tpu.matmul %8, %10, %cst_10 {dimension_numbers = #tpu.dot_dimension_numbers<[2], [0], [0, 1], [1], [0, 0, 0, 1, 1, 1], [], []>} : vector<16x16x8xf32>, vector<8x32xf32>, vector<16x16x32xf32> -> vector<16x16x32xf32>
    "tpu.trace_stop"() : () -> ()
    %12 = arith.addf %7, %11 : vector<16x16x32xf32>
    "tpu.trace_start"() <{level = 10 : i32, message = "bnm,bmf->bnf"}> : () -> ()
    %cst_11 = arith.constant dense<0.000000e+00> : vector<16x16x8xf32>
    %13 = tpu.matmul %4, %8, %cst_11 {dimension_numbers = #tpu.dot_dimension_numbers<[2], [1], [1], [2], [0, 0, 0, 1, 1, 2], [0], [0]>} : vector<16x16x16xf32>, vector<16x16x8xf32>, vector<16x16x8xf32> -> vector<16x16x8xf32>
    "tpu.trace_stop"() : () -> ()
    %c2 = arith.constant 2 : index
    %c0_12 = arith.constant 0 : index
    %c0_13 = arith.constant 0 : index
    %14 = vector.load %arg3[%c2, %c0_12, %c0_13] : memref<3x8x32xf32, #tpu.memory_space<vmem>>, vector<1x8x32xf32>
    %15 = vector.shape_cast %14 : vector<1x8x32xf32> to vector<8x32xf32>
    "tpu.trace_start"() <{level = 10 : i32, message = "bnf,fc->bnc"}> : () -> ()
    %cst_14 = arith.constant dense<0.000000e+00> : vector<16x16x32xf32>
    %16 = tpu.matmul %13, %15, %cst_14 {dimension_numbers = #tpu.dot_dimension_numbers<[2], [0], [0, 1], [1], [0, 0, 0, 1, 1, 1], [], []>} : vector<16x16x8xf32>, vector<8x32xf32>, vector<16x16x32xf32> -> vector<16x16x32xf32>
    "tpu.trace_stop"() : () -> ()
    %17 = arith.addf %12, %16 : vector<16x16x32xf32>
    %c0_15 = arith.constant 0 : index
    %c0_16 = arith.constant 0 : index
    %18 = vector.load %arg4[%c0_15, %c0_16] : memref<1x32xf32, #tpu.memory_space<vmem>>, vector<1x32xf32>
    %19 = vector.shape_cast %18 : vector<1x32xf32> to vector<1x1x32xf32>
    %20 = vector.broadcast %19 : vector<1x1x32xf32> to vector<16x16x32xf32>
    %21 = arith.addf %17, %20 : vector<16x16x32xf32>
    %cst_17 = arith.constant 0.000000e+00 : f32
    %22 = vector.broadcast %cst_17 : f32 to vector<16x16x32xf32>
    %23 = arith.maximumf %21, %22 : vector<16x16x32xf32>
    %cst_18 = arith.constant 0.000000e+00 : f32
    %24 = vector.broadcast %cst_18 : f32 to vector<2x16x32xf32>
    %25 = vector.extract_strided_slice %23 {offsets = [0, 0, 0], sizes = [14, 16, 32], strides = [1, 1, 1]} : vector<16x16x32xf32> to vector<14x16x32xf32>
    %26 = tpu.concatenate %24, %25 in 0 : vector<2x16x32xf32>, vector<14x16x32xf32> -> vector<16x16x32xf32>
    %27 = vector.extract_strided_slice %23 {offsets = [2, 0, 0], sizes = [14, 16, 32], strides = [1, 1, 1]} : vector<16x16x32xf32> to vector<14x16x32xf32>
    %28 = tpu.concatenate %27, %24 in 0 : vector<14x16x32xf32>, vector<2x16x32xf32> -> vector<16x16x32xf32>
    %c0_19 = arith.constant 0 : index
    %c0_20 = arith.constant 0 : index
    %c0_21 = arith.constant 0 : index
    %29 = vector.load %arg5[%c0_19, %c0_20, %c0_21] : memref<3x32x32xf32, #tpu.memory_space<vmem>>, vector<1x32x32xf32>
    %30 = vector.shape_cast %29 : vector<1x32x32xf32> to vector<32x32xf32>
    "tpu.trace_start"() <{level = 10 : i32, message = "bnc,co->bno"}> : () -> ()
    %cst_22 = arith.constant dense<0.000000e+00> : vector<16x16x32xf32>
    %31 = tpu.matmul %26, %30, %cst_22 {dimension_numbers = #tpu.dot_dimension_numbers<[2], [0], [0, 1], [1], [0, 0, 0, 1, 1, 1], [], []>} : vector<16x16x32xf32>, vector<32x32xf32>, vector<16x16x32xf32> -> vector<16x16x32xf32>
    "tpu.trace_stop"() : () -> ()
    %c1_23 = arith.constant 1 : index
    %c0_24 = arith.constant 0 : index
    %c0_25 = arith.constant 0 : index
    %32 = vector.load %arg5[%c1_23, %c0_24, %c0_25] : memref<3x32x32xf32, #tpu.memory_space<vmem>>, vector<1x32x32xf32>
    %33 = vector.shape_cast %32 : vector<1x32x32xf32> to vector<32x32xf32>
    "tpu.trace_start"() <{level = 10 : i32, message = "bnc,co->bno"}> : () -> ()
    %cst_26 = arith.constant dense<0.000000e+00> : vector<16x16x32xf32>
    %34 = tpu.matmul %23, %33, %cst_26 {dimension_numbers = #tpu.dot_dimension_numbers<[2], [0], [0, 1], [1], [0, 0, 0, 1, 1, 1], [], []>} : vector<16x16x32xf32>, vector<32x32xf32>, vector<16x16x32xf32> -> vector<16x16x32xf32>
    "tpu.trace_stop"() : () -> ()
    %35 = arith.addf %31, %34 : vector<16x16x32xf32>
    %c2_27 = arith.constant 2 : index
    %c0_28 = arith.constant 0 : index
    %c0_29 = arith.constant 0 : index
    %36 = vector.load %arg5[%c2_27, %c0_28, %c0_29] : memref<3x32x32xf32, #tpu.memory_space<vmem>>, vector<1x32x32xf32>
    %37 = vector.shape_cast %36 : vector<1x32x32xf32> to vector<32x32xf32>
    "tpu.trace_start"() <{level = 10 : i32, message = "bnc,co->bno"}> : () -> ()
    %cst_30 = arith.constant dense<0.000000e+00> : vector<16x16x32xf32>
    %38 = tpu.matmul %28, %37, %cst_30 {dimension_numbers = #tpu.dot_dimension_numbers<[2], [0], [0, 1], [1], [0, 0, 0, 1, 1, 1], [], []>} : vector<16x16x32xf32>, vector<32x32xf32>, vector<16x16x32xf32> -> vector<16x16x32xf32>
    "tpu.trace_stop"() : () -> ()
    %39 = arith.addf %35, %38 : vector<16x16x32xf32>
    %c0_31 = arith.constant 0 : index
    %c0_32 = arith.constant 0 : index
    %40 = vector.load %arg6[%c0_31, %c0_32] : memref<1x32xf32, #tpu.memory_space<vmem>>, vector<1x32xf32>
    %41 = vector.shape_cast %40 : vector<1x32xf32> to vector<1x1x32xf32>
    %42 = vector.broadcast %41 : vector<1x1x32xf32> to vector<16x16x32xf32>
    %43 = arith.addf %39, %42 : vector<16x16x32xf32>
    %c0_33 = arith.constant 0 : index
    %c0_34 = arith.constant 0 : index
    %44 = vector.load %arg7[%c0_33, %c0_34] : memref<8x32xf32, #tpu.memory_space<vmem>>, vector<8x32xf32>
    "tpu.trace_start"() <{level = 10 : i32, message = "bnf,fo->bno"}> : () -> ()
    %cst_35 = arith.constant dense<0.000000e+00> : vector<16x16x32xf32>
    %45 = tpu.matmul %0, %44, %cst_35 {dimension_numbers = #tpu.dot_dimension_numbers<[2], [0], [0, 1], [1], [0, 0, 0, 1, 1, 1], [], []>} : vector<16x16x8xf32>, vector<8x32xf32>, vector<16x16x32xf32> -> vector<16x16x32xf32>
    "tpu.trace_stop"() : () -> ()
    %c0_36 = arith.constant 0 : index
    %c0_37 = arith.constant 0 : index
    %46 = vector.load %arg8[%c0_36, %c0_37] : memref<1x32xf32, #tpu.memory_space<vmem>>, vector<1x32xf32>
    %47 = vector.shape_cast %46 : vector<1x32xf32> to vector<1x1x32xf32>
    %48 = vector.broadcast %47 : vector<1x1x32xf32> to vector<16x16x32xf32>
    %49 = arith.addf %45, %48 : vector<16x16x32xf32>
    %50 = arith.addf %43, %49 : vector<16x16x32xf32>
    %cst_38 = arith.constant 0.000000e+00 : f32
    %51 = vector.broadcast %cst_38 : f32 to vector<16x16x32xf32>
    %52 = arith.maximumf %50, %51 : vector<16x16x32xf32>
    %cst_39 = arith.constant dense<0.000000e+00> : vector<16x16xf32>
    %53 = vector.multi_reduction <add>, %52, %cst_39 [2] : vector<16x16x32xf32> to vector<16x16xf32>
    %54 = vector.shape_cast %53 : vector<16x16xf32> to vector<16x16x1xf32>
    %cst_40 = arith.constant 3.200000e+01 : f32
    %55 = vector.broadcast %cst_40 : f32 to vector<16x16x1xf32>
    %56 = arith.divf %54, %55 : vector<16x16x1xf32>
    %57 = vector.broadcast %56 : vector<16x16x1xf32> to vector<16x16x32xf32>
    %58 = arith.subf %52, %57 : vector<16x16x32xf32>
    %59 = arith.mulf %58, %58 : vector<16x16x32xf32>
    %cst_41 = arith.constant dense<0.000000e+00> : vector<16x16xf32>
    %60 = vector.multi_reduction <add>, %59, %cst_41 [2] : vector<16x16x32xf32> to vector<16x16xf32>
    %61 = vector.shape_cast %60 : vector<16x16xf32> to vector<16x16x1xf32>
    %cst_42 = arith.constant 3.200000e+01 : f32
    %62 = vector.broadcast %cst_42 : f32 to vector<16x16x1xf32>
    %63 = arith.divf %61, %62 : vector<16x16x1xf32>
    %cst_43 = arith.constant 9.99999974E-6 : f32
    %64 = vector.broadcast %cst_43 : f32 to vector<16x16x1xf32>
    %65 = arith.addf %63, %64 : vector<16x16x1xf32>
    %66 = math.rsqrt %65 : vector<16x16x1xf32>
    %67 = vector.broadcast %66 : vector<16x16x1xf32> to vector<16x16x32xf32>
    %68 = arith.mulf %58, %67 : vector<16x16x32xf32>
    %c0_44 = arith.constant 0 : index
    %c0_45 = arith.constant 0 : index
    %69 = vector.load %arg9[%c0_44, %c0_45] : memref<1x32xf32, #tpu.memory_space<vmem>>, vector<1x32xf32>
    %70 = vector.shape_cast %69 : vector<1x32xf32> to vector<1x1x32xf32>
    %71 = vector.broadcast %70 : vector<1x1x32xf32> to vector<16x16x32xf32>
    %72 = arith.mulf %68, %71 : vector<16x16x32xf32>
    %c0_46 = arith.constant 0 : index
    %c0_47 = arith.constant 0 : index
    %73 = vector.load %arg10[%c0_46, %c0_47] : memref<1x32xf32, #tpu.memory_space<vmem>>, vector<1x32xf32>
    %74 = vector.shape_cast %73 : vector<1x32xf32> to vector<1x1x32xf32>
    %75 = vector.broadcast %74 : vector<1x1x32xf32> to vector<16x16x32xf32>
    %76 = arith.addf %72, %75 : vector<16x16x32xf32>
    %c0_48 = arith.constant 0 : index
    %c0_49 = arith.constant 0 : index
    %c0_50 = arith.constant 0 : index
    %77 = vector.load %arg11[%c0_48, %c0_49, %c0_50] : memref<16x16x32xf32, #tpu.memory_space<vmem>>, vector<16x16x32xf32>
    tpu.vector_store %arg11[%c0_48, %c0_49, %c0_50], %76 {strides = array<i32>} : memref<16x16x32xf32, #tpu.memory_space<vmem>>, vector<16x16x32xf32>,
    return
  }
  func.func @transform_0(%arg0: i32) -> (i32, i32, i32) {
    %c0_i32 = arith.constant 0 : i32
    %c0_i32_0 = arith.constant 0 : i32
    %c0_i32_1 = arith.constant 0 : i32
    %c0_i32_2 = arith.constant 0 : i32
    return %c0_i32, %c0_i32_0, %c0_i32_1 : i32, i32, i32
  }
  func.func @transform_1(%arg0: i32) -> (i32, i32) {
    %c0_i32 = arith.constant 0 : i32
    %c0_i32_0 = arith.constant 0 : i32
    %c0_i32_1 = arith.constant 0 : i32
    return %c0_i32, %c0_i32_0 : i32, i32
  }
  func.func @transform_2(%arg0: i32) -> (i32, i32, i32) {
    %c0_i32 = arith.constant 0 : i32
    %c0_i32_0 = arith.constant 0 : i32
    %c0_i32_1 = arith.constant 0 : i32
    %c0_i32_2 = arith.constant 0 : i32
    return %c0_i32, %c0_i32_0, %c0_i32_1 : i32, i32, i32
  }
  func.func @transform_3(%arg0: i32) -> (i32, i32) {
    %c0_i32 = arith.constant 0 : i32
    %c0_i32_0 = arith.constant 0 : i32
    %c0_i32_1 = arith.constant 0 : i32
    return %c0_i32, %c0_i32_0 : i32, i32
  }
  func.func @transform_4(%arg0: i32) -> (i32, i32, i32) {
    %c0_i32 = arith.constant 0 : i32
    %c0_i32_0 = arith.constant 0 : i32
    %c0_i32_1 = arith.constant 0 : i32
    %c0_i32_2 = arith.constant 0 : i32
    return %c0_i32, %c0_i32_0, %c0_i32_1 : i32, i32, i32
  }
  func.func @transform_5(%arg0: i32) -> (i32, i32) {
    %c0_i32 = arith.constant 0 : i32
    %c0_i32_0 = arith.constant 0 : i32
    %c0_i32_1 = arith.constant 0 : i32
    return %c0_i32, %c0_i32_0 : i32, i32
  }
  func.func @transform_6(%arg0: i32) -> (i32, i32) {
    %c0_i32 = arith.constant 0 : i32
    %c0_i32_0 = arith.constant 0 : i32
    %c0_i32_1 = arith.constant 0 : i32
    return %c0_i32, %c0_i32_0 : i32, i32
  }
  func.func @transform_7(%arg0: i32) -> (i32, i32) {
    %c0_i32 = arith.constant 0 : i32
    %c0_i32_0 = arith.constant 0 : i32
    %c0_i32_1 = arith.constant 0 : i32
    return %c0_i32, %c0_i32_0 : i32, i32
  }
  func.func @transform_8(%arg0: i32) -> (i32, i32) {
    %c0_i32 = arith.constant 0 : i32
    %c0_i32_0 = arith.constant 0 : i32
    %c0_i32_1 = arith.constant 0 : i32
    return %c0_i32, %c0_i32_0 : i32, i32
  }
  func.func @transform_9(%arg0: i32) -> (i32, i32) {
    %c0_i32 = arith.constant 0 : i32
    %c0_i32_0 = arith.constant 0 : i32
    %c0_i32_1 = arith.constant 0 : i32
    return %c0_i32, %c0_i32_0 : i32, i32
  }
  func.func @transform_10(%arg0: i32) -> (i32, i32, i32) {
    %c0_i32 = arith.constant 0 : i32
    %c0_i32_0 = arith.constant 0 : i32
    %c0_i32_1 = arith.constant 0 : i32
    %c0_i32_2 = arith.constant 0 : i32
    return %c0_i32, %c0_i32_0, %c0_i32_1 : i32, i32, i32
  }
}

</mosaic_0001>

<bundles_post_ra>
// kernel: tpu_custom_call.1
= control target key start
LH: loop header
LB: loop body
LE: loop exit
PB: predicated region body
PF: predicated region fallthrough
CT: control target
= control target key end

     0   :  { %vm71_vm0 = vcmask 130048   ;;  %s8634_s0 = inlined_call_operand.vmem [shape: f32[16,16,8], index: 0, kind: input, shape index: {}]   ;;  %s8635_s1 = inlined_call_operand.vmem [shape: f32[16,16], index: 1, kind: input, shape index: {}]   ;;  %s8636_s2 = inlined_call_operand.vmem [shape: f32[3,8,32], index: 2, kind: input, shape index: {}]   ;;  %s8637_s3 = inlined_call_operand.vmem [shape: f32[1,32], index: 3, kind: input, shape index: {}]   ;;  %s8638_s4 = inlined_call_operand.vmem [shape: f32[3,32,32], index: 4, kind: input, shape index: {}]   ;;  %s8639_s5 = inlined_call_operand.vmem [shape: f32[1,32], index: 5, kind: input, shape index: {}]   ;;  %s8640_s6 = inlined_call_operand.vmem [shape: f32[8,32], index: 6, kind: input, shape index: {}]   ;;  %s8641_s7 = inlined_call_operand.vmem [shape: f32[1,32], index: 7, kind: input, shape index: {}]   ;;  %s8642_s8 = inlined_call_operand.vmem [shape: f32[1,32], index: 8, kind: input, shape index: {}]   ;;  %s8643_s9 = inlined_call_operand.vmem [shape: f32[1,32], index: 9, kind: input, shape index: {}]   ;;  %s8644_s10 = inlined_call_operand.hbm [shape: f32[16,16,32], index: 10, kind: output, shape index: {}]  }
   0x1   :  { %v7066_v0 = vld [vmem:[%s8634_s0] sm:$0xff]  ;;  %v7071_v1 = vld [vmem:[%s8634_s0 + $0x8] sm:$0xff]  ;;  %v7085_v4 = vld [vmem:[%s8634_s0 + $0x10] sm:$0xff] }
   0x2   :  { %v7076_v2 = vld [vmem:[%s8635_s1] sm:$0xff]  ;;  %v6504_v3 = vpack.c.bf16 %v7071_v1, %v7066_v0  ;;  %v7090_v5 = vld [vmem:[%s8634_s0 + $0x18] sm:$0xff]  ;;  %v7104_v8 = vld [vmem:[%s8634_s0 + $0x28] sm:$0xff] }
   0x3   :  { %5916 = vmatprep.mubr.msk.f32.mxu0 %vm71_vm0, %v7076_v2  ;;  %5923 = vmatprep.mubr.msk.f32.mxu1 %vm71_vm0, %v7076_v2  ;;  %v6508_v6 = vpack.c.bf16 %v7090_v5, %v7085_v4  ;;  %v7099_v7 = vld [vmem:[%s8634_s0 + $0x20] sm:$0xff]  ;;  %v7109_v9 = vld [vmem:[%s8634_s0 + $0x30] sm:$0xff]  ;;  %v7116_v11 = vld [vmem:[%s8634_s0 + $0x38] sm:$0xff] }
   0x4   :  { %6505 = vmatprep.subr.bf16.mxu0 %v6504_v3  ;;  %v6512_v10 = vpack.c.bf16 %v7104_v8, %v7099_v7  ;;  %v7121_v12 = vld [vmem:[%s8634_s0 + $0x40] sm:$0xff]  ;;  %v7126_v13 = vld [vmem:[%s8634_s0 + $0x48] sm:$0xff]  ;;  %v6516_v15 = vpack.c.bf16 %v7116_v11, %v7109_v9  ;;  %v7138_v16 = vld [vmem:[%s8634_s0 + $0x50] sm:$0xff] }
   0x5   :  { %6507 = vmatpush3.bf16.msra.mxu0 %v6504_v3  ;;  %6509 = vmatprep.subr.bf16.mxu1 %v6508_v6  ;;  %v7131_v14 = vld [vmem:[%s8635_s1 + $0x8] sm:$0xff]  ;;  %v7143_v17 = vld [vmem:[%s8634_s0 + $0x58] sm:$0xff]  ;;  %v6520_v18 = vpack.c.bf16 %v7126_v13, %v7121_v12  ;;  %v7154_v20 = vld [vmem:[%s8634_s0 + $0x60] sm:$0xff] }
   0x6   :  { %6511 = vmatpush3.bf16.msra.mxu1 %v6508_v6  ;;  %6513 = vmatprep.subr.bf16.mxu0 %v6512_v10  ;;  %v6524_v19 = vpack.c.bf16 %v7143_v17, %v7138_v16  ;;  %v7159_v21 = vld [vmem:[%s8634_s0 + $0x68] sm:$0xff]  ;;  %v7166_v22 = vld [vmem:[%s8634_s0 + $0x70] sm:$0xff]  ;;  %v7171_v23 = vld [vmem:[%s8634_s0 + $0x78] sm:$0xff] }
   0x7   :  { %6517 = vmatprep.subr.bf16.mxu1 %v6516_v15  ;;  %v6528_v24 = vpack.c.bf16 %v7159_v21, %v7154_v20  ;;  %v6532_v25 = vpack.c.bf16 %v7171_v23, %v7166_v22  ;;  %v7186_v26 = vld [vmem:[%s8634_s0 + $0x80] sm:$0xff]  ;;  %v7191_v27 = vld [vmem:[%s8634_s0 + $0x88] sm:$0xff] }
   0x8   :  { %5917 = vmatmul.mubr.msk.f32.vlgmr.msra.gmra.mrb[0].mxu0 %vm71_vm0, %v7131_v14 }
   0x9   :  { %5924 = vmatmul.mubr.msk.f32.vlgmr.msra.gmra.mrb[0].mxu1 %vm71_vm0, %v7131_v14  ;;  %6515 = vmatpush3.bf16.msra.mxu0 %v6512_v10 }
   0xa   :  { %5930 = vmatprep.mubr.msk.f32.mxu0 %vm71_vm0, %v7076_v2  ;;  %6519 = vmatpush3.bf16.msra.mxu1 %v6516_v15 }
   0xb   :  { %5937 = vmatprep.mubr.msk.f32.mxu1 %vm71_vm0, %v7076_v2  ;;  %6521 = vmatprep.subr.bf16.mxu0 %v6520_v18 }
   0xc   :  { %5931 = vmatmul.mubr.msk.f32.vlgmr.msra.gmra.mrb[2].mxu0 %vm71_vm0, %v7131_v14  ;;  %6525 = vmatprep.subr.bf16.mxu1 %v6524_v19 }
   0xd   :  { %15 = vsyncpa [#allocation3], 0  ;;  %5938 = vmatmul.mubr.msk.f32.vlgmr.msra.gmra.mrb[2].mxu1 %vm71_vm0, %v7131_v14  ;;  %6523 = vmatpush3.bf16.msra.mxu0 %v6520_v18  ;;  %v7198_v28 = vld [vmem:[%s8634_s0 + $0x90] sm:$0xff]  ;;  %v7203_v29 = vld [vmem:[%s8634_s0 + $0x98] sm:$0xff]  ;;  %v6536_v30 = vpack.c.bf16 %v7191_v27, %v7186_v26  ;;  %vm1280_vm1 = vcmask 64512   ;;  %vm3558_vm2 = vcmask 261120  }
   0xe   :  { %5944 = vmatprep.mubr.msk.f32.mxu0 %vm71_vm0, %v7076_v2  ;;  %6527 = vmatpush3.bf16.msra.mxu1 %v6524_v19  ;;  %v6540_v31 = vpack.c.bf16 %v7203_v29, %v7198_v28  ;;  %v7218_v32 = vld [vmem:[%s8634_s0 + $0xa0] sm:$0xff]  ;;  %v7223_v33 = vld [vmem:[%s8634_s0 + $0xa8] sm:$0xff]  ;;  %v7230_v34 = vld [vmem:[%s8634_s0 + $0xb0] sm:$0xff] }
   0xf   :  { %5951 = vmatprep.mubr.msk.f32.mxu1 %vm71_vm0, %v7076_v2  ;;  %6529 = vmatprep.subr.bf16.mxu0 %v6528_v24  ;;  %v7235_v35 = vld [vmem:[%s8634_s0 + $0xb8] sm:$0xff]  ;;  %v6544_v36 = vpack.c.bf16 %v7223_v33, %v7218_v32  ;;  %v7250_v38 = vld [vmem:[%s8634_s0 + $0xc0] sm:$0xff]  ;;  %v7255_v39 = vld [vmem:[%s8634_s0 + $0xc8] sm:$0xff] }
  0x10   :  { %5945 = vmatmul.mubr.msk.f32.vlgmr.msra.gmra.mrb[4].mxu0 %vm71_vm0, %v7131_v14  ;;  %6533 = vmatprep.subr.bf16.mxu1 %v6532_v25  ;;  %v6548_v37 = vpack.c.bf16 %v7235_v35, %v7230_v34  ;;  %v7262_v40 = vld [vmem:[%s8634_s0 + $0xd0] sm:$0xff]  ;;  %v7267_v41 = vld [vmem:[%s8634_s0 + $0xd8] sm:$0xff]  ;;  %v6552_v42 = vpack.c.bf16 %v7255_v39, %v7250_v38  ;;  %v7282_v44 = vld [vmem:[%s8634_s0 + $0xe0] sm:$0xff] }
  0x11   :  { %5952 = vmatmul.mubr.msk.f32.vlgmr.msra.gmra.mrb[4].mxu1 %vm71_vm0, %v7131_v14  ;;  %6531 = vmatpush3.bf16.msra.mxu0 %v6528_v24  ;;  %v6556_v43 = vpack.c.bf16 %v7267_v41, %v7262_v40  ;;  %v7287_v45 = vld [vmem:[%s8634_s0 + $0xe8] sm:$0xff]  ;;  %v7294_v46 = vld [vmem:[%s8634_s0 + $0xf0] sm:$0xff]  ;;  %v7299_v47 = vld [vmem:[%s8634_s0 + $0xf8] sm:$0xff] }
  0x12   :  { %5958 = vmatprep.mubr.msk.f32.mxu0 %vm71_vm0, %v7076_v2  ;;  %6535 = vmatpush3.bf16.msra.mxu1 %v6532_v25  ;;  %v6560_v48 = vpack.c.bf16 %v7287_v45, %v7282_v44  ;;  %v6564_v49 = vpack.c.bf16 %v7299_v47, %v7294_v46  ;;  %v5281_v50 = vld [vmem:[%s8636_s2 + $0x8] sm:$0xff]  ;;  %v70_v51 = vld [vmem:[%s8636_s2] sm:$0xff]  ;;  %v7342_v58 = vld [vmem:[%s8636_s2 + $0x10] sm:$0xff] }
  0x13   :  { %5965 = vmatprep.mubr.msk.f32.mxu1 %vm71_vm0, %v7076_v2  ;;  %6537 = vmatprep.subr.bf16.mxu0 %v6536_v30 }
  0x14   :  { %5959 = vmatmul.mubr.msk.f32.vlgmr.msra.gmra.mrb[6].mxu0 %vm71_vm0, %v7131_v14  ;;  %6541 = vmatprep.subr.bf16.mxu1 %v6540_v31 }
  0x15   :  { %5966 = vmatmul.mubr.msk.f32.vlgmr.msra.gmra.mrb[6].mxu1 %vm71_vm0, %v7131_v14  ;;  %6539 = vmatpush3.bf16.msra.mxu0 %v6536_v30 }
  0x16   :  { %5972 = vmatprep.mubr.msk.f32.mxu0 %vm71_vm0, %v7076_v2  ;;  %6543 = vmatpush3.bf16.msra.mxu1 %v6540_v31 }
  0x17   :  { %5979 = vmatprep.mubr.msk.f32.mxu1 %vm71_vm0, %v7076_v2  ;;  %6545 = vmatprep.subr.bf16.mxu0 %v6544_v36 }
  0x18   :  { %5973 = vmatmul.mubr.msk.f32.vlgmr.msra.gmra.mrb[8].mxu0 %vm71_vm0, %v7131_v14  ;;  %6549 = vmatprep.subr.bf16.mxu1 %v6548_v37 }
  0x19   :  { %5980 = vmatmul.mubr.msk.f32.vlgmr.msra.gmra.mrb[8].mxu1 %vm71_vm0, %v7131_v14  ;;  %6547 = vmatpush3.bf16.msra.mxu0 %v6544_v36 }
  0x1a   :  { %5986 = vmatprep.mubr.msk.f32.mxu0 %vm71_vm0, %v7076_v2  ;;  %6551 = vmatpush3.bf16.msra.mxu1 %v6548_v37 }
  0x1b   :  { %5993 = vmatprep.mubr.msk.f32.mxu1 %vm71_vm0, %v7076_v2  ;;  %6553 = vmatprep.subr.bf16.mxu0 %v6552_v42 }
  0x1c   :  { %5987 = vmatmul.mubr.msk.f32.vlgmr.msra.gmra.mrb[10].mxu0 %vm71_vm0, %v7131_v14  ;;  %6557 = vmatprep.subr.bf16.mxu1 %v6556_v43 }
  0x1d   :  { %5994 = vmatmul.mubr.msk.f32.vlgmr.msra.gmra.mrb[10].mxu1 %vm71_vm0, %v7131_v14  ;;  %6555 = vmatpush3.bf16.msra.mxu0 %v6552_v42 }
  0x1e   :  { %6000 = vmatprep.mubr.msk.f32.mxu0 %vm71_vm0, %v7076_v2  ;;  %6559 = vmatpush3.bf16.msra.mxu1 %v6556_v43 }
  0x1f   :  { %6007 = vmatprep.mubr.msk.f32.mxu1 %vm71_vm0, %v7076_v2  ;;  %6561 = vmatprep.subr.bf16.mxu0 %v6560_v48 }
  0x20   :  { %6001 = vmatmul.mubr.msk.f32.vlgmr.msra.gmra.mrb[12].mxu0 %vm71_vm0, %v7131_v14  ;;  %6565 = vmatprep.subr.bf16.mxu1 %v6564_v49 }
  0x21   :  { %6008 = vmatmul.mubr.msk.f32.vlgmr.msra.gmra.mrb[12].mxu1 %vm71_vm0, %v7131_v14  ;;  %6563 = vmatpush3.bf16.msra.mxu0 %v6560_v48 }
  0x22   :  { %6014 = vmatprep.mubr.msk.f32.mxu0 %vm71_vm0, %v7076_v2  ;;  %6567 = vmatpush3.bf16.msra.mxu1 %v6564_v49 }
  0x23   :  { %6021 = vmatprep.mubr.msk.f32.mxu1 %vm71_vm0, %v7076_v2  ;;  %6024 = vmatprep.subr.mxu0 %v5281_v50 }
  0x24   :  { %6015 = vmatmul.mubr.msk.f32.vlgmr.msra.gmra.mrb[14].mxu0 %vm71_vm0, %v7131_v14 }
  0x25   :  { %6022 = vmatmul.mubr.msk.f32.vlgmr.msra.gmra.mrb[14].mxu1 %vm71_vm0, %v7131_v14  ;;  %6025 = vmatpush3.msra.mxu0 %v5281_v50 }
  0x26   :  { %6128 = vmatprep.mubr.msk.f32.mxu1 %vm71_vm0, %v7076_v2  ;;  %6074 = vmatprep.subr.mxu0 %v70_v51 }
  0xdb   :  { %v5918_v52 = vpop.f32.mrb[0].mxu0 }
  0xdc   :  { %v144_v53 = vpop.f32.mrb[1].mxu0  ;;  %v5925_v54 = vpop.f32.mrb[0].mxu1 }
  0xdd   :  { %v6568_v55 = vpack.c.bf16 %v5918_v52, %v144_v53  ;;  %6026 = vmatprep.mubr.msk.f32.mxu0 %vm1280_vm1, %v144_v53  ;;  %v219_v56 = vpop.f32.mrb[1].mxu1 }
  0xde   :  { %6027 = vmatmul.mubr.msk.f32.vlgmr.msra.gmra.mrb[16].mxu0 %vm1280_vm1, %v5918_v52  ;;  %v6572_v57 = vpack.c.bf16 %v5925_v54, %v219_v56 }
  0xdf   :  { %6569 = vmatprep.subr.bf16.mxu1 %v6568_v55  ;;  %6029 = vmatprep.mubr.msk.f32.mxu0 %vm1280_vm1, %v219_v56  ;;  %v5932_v59 = vpop.f32.mrb[2].mxu0 }
  0xe0   :  { %6571 = vmatpush3.bf16.msra.mxu1 %v6568_v55  ;;  %v294_v60 = vpop.f32.mrb[3].mxu0  ;;  %v5939_v61 = vpop.f32.mrb[2].mxu1  ;;  %6075 = vmatpush3.msra.mxu0 %v70_v51 }
  0xe1   :  { %6573 = vmatprep.subr.bf16.mxu1 %v6572_v57  ;;  %v6576_v62 = vpack.c.bf16 %v5932_v59, %v294_v60  ;;  %v369_v63 = vpop.f32.mrb[3].mxu1  ;;  %6236 = vmatprep.subr.mxu0 %v7342_v58 }
  0xe2   :  { %6030 = vmatmul.mubr.msk.f32.gmra.mrb[18].mxu0 %vm1280_vm1, %v5925_v54  ;;  %v6580_v3 = vpack.c.bf16 %v5939_v61, %v369_v63 }
  0xe3   :  { %6129 = vmatmul.mubr.msk.f32.vlgmr.msra.gmra.mrb[16].mxu1 %vm71_vm0, %v7131_v14  ;;  %6032 = vmatprep.mubr.msk.f32.mxu0 %vm1280_vm1, %v294_v60  ;;  %v5946_v6 = vpop.f32.mrb[4].mxu0 }
  0xe4   :  { %6575 = vmatpush3.bf16.msra.mxu1 %v6572_v57  ;;  %6135 = vmatprep.mubr.msk.f32.mxu1 %vm71_vm0, %v7076_v2  ;;  %v444_v10 = vpop.f32.mrb[5].mxu0  ;;  %v5953_v15 = vpop.f32.mrb[4].mxu1 }
  0xe5   :  { %6577 = vmatprep.subr.bf16.mxu1 %v6576_v62  ;;  %v6584_v18 = vpack.c.bf16 %v5946_v6, %v444_v10  ;;  %v519_v19 = vpop.f32.mrb[5].mxu1 }
  0xe6   :  { %6033 = vmatmul.mubr.msk.f32.gmra.mrb[20].mxu0 %vm1280_vm1, %v5932_v59  ;;  %v6588_v24 = vpack.c.bf16 %v5953_v15, %v519_v19 }
  0xe7   :  { %6136 = vmatmul.mubr.msk.f32.vlgmr.msra.gmra.mrb[18].mxu1 %vm71_vm0, %v7131_v14  ;;  %6035 = vmatprep.mubr.msk.f32.mxu0 %vm1280_vm1, %v369_v63  ;;  %v5960_v25 = vpop.f32.mrb[6].mxu0 }
  0xe8   :  { %6579 = vmatpush3.bf16.msra.mxu1 %v6576_v62  ;;  %6142 = vmatprep.mubr.msk.f32.mxu1 %vm71_vm0, %v7076_v2  ;;  %v594_v30 = vpop.f32.mrb[7].mxu0  ;;  %v5967_v31 = vpop.f32.mrb[6].mxu1 }
  0xe9   :  { %6581 = vmatprep.subr.bf16.mxu1 %v6580_v3  ;;  %v6592_v36 = vpack.c.bf16 %v5960_v25, %v594_v30  ;;  %v669_v37 = vpop.f32.mrb[7].mxu1 }
  0xea   :  { %6036 = vmatmul.mubr.msk.f32.gmra.mrb[22].mxu0 %vm1280_vm1, %v5939_v61  ;;  %v6596_v42 = vpack.c.bf16 %v5967_v31, %v669_v37 }
  0xeb   :  { %6143 = vmatmul.mubr.msk.f32.vlgmr.msra.gmra.mrb[20].mxu1 %vm71_vm0, %v7131_v14  ;;  %6038 = vmatprep.mubr.msk.f32.mxu0 %vm1280_vm1, %v444_v10  ;;  %v5974_v43 = vpop.f32.mrb[8].mxu0 }
  0xec   :  { %6583 = vmatpush3.bf16.msra.mxu1 %v6580_v3  ;;  %6149 = vmatprep.mubr.msk.f32.mxu1 %vm71_vm0, %v7076_v2  ;;  %v744_v48 = vpop.f32.mrb[9].mxu0  ;;  %v5981_v49 = vpop.f32.mrb[8].mxu1 }
  0xed   :  { %6585 = vmatprep.subr.bf16.mxu1 %v6584_v18  ;;  %v6600_v50 = vpack.c.bf16 %v5974_v43, %v744_v48  ;;  %v819_v51 = vpop.f32.mrb[9].mxu1 }
  0xee   :  { %6039 = vmatmul.mubr.msk.f32.gmra.mrb[24].mxu0 %vm1280_vm1, %v5946_v6  ;;  %v6604_v52 = vpack.c.bf16 %v5981_v49, %v819_v51 }
  0xef   :  { %6150 = vmatmul.mubr.msk.f32.vlgmr.msra.gmra.mrb[22].mxu1 %vm71_vm0, %v7131_v14  ;;  %6041 = vmatprep.mubr.msk.f32.mxu0 %vm1280_vm1, %v519_v19  ;;  %v5988_v53 = vpop.f32.mrb[10].mxu0 }
  0xf0   :  { %6587 = vmatpush3.bf16.msra.mxu1 %v6584_v18  ;;  %6156 = vmatprep.mubr.msk.f32.mxu1 %vm71_vm0, %v7076_v2  ;;  %v894_v54 = vpop.f32.mrb[11].mxu0  ;;  %v5995_v55 = vpop.f32.mrb[10].mxu1 }
  0xf1   :  { %6589 = vmatprep.subr.bf16.mxu1 %v6588_v24  ;;  %v6608_v56 = vpack.c.bf16 %v5988_v53, %v894_v54  ;;  %v969_v57 = vpop.f32.mrb[11].mxu1 }
  0xf2   :  { %6042 = vmatmul.mubr.msk.f32.gmra.mrb[26].mxu0 %vm1280_vm1, %v5953_v15  ;;  %v6612_v59 = vpack.c.bf16 %v5995_v55, %v969_v57 }
  0xf3   :  { %6157 = vmatmul.mubr.msk.f32.vlgmr.msra.gmra.mrb[24].mxu1 %vm71_vm0, %v7131_v14  ;;  %6044 = vmatprep.mubr.msk.f32.mxu0 %vm1280_vm1, %v594_v30  ;;  %v6002_v60 = vpop.f32.mrb[12].mxu0 }
  0xf4   :  { %6591 = vmatpush3.bf16.msra.mxu1 %v6588_v24  ;;  %6163 = vmatprep.mubr.msk.f32.mxu1 %vm71_vm0, %v7076_v2  ;;  %v1044_v61 = vpop.f32.mrb[13].mxu0  ;;  %v6009_v62 = vpop.f32.mrb[12].mxu1 }
  0xf5   :  { %6593 = vmatprep.subr.bf16.mxu1 %v6592_v36  ;;  %v6616_v63 = vpack.c.bf16 %v6002_v60, %v1044_v61  ;;  %v1119_v3 = vpop.f32.mrb[13].mxu1 }
  0xf6   :  { %6045 = vmatmul.mubr.msk.f32.gmra.mrb[28].mxu0 %vm1280_vm1, %v5960_v25  ;;  %v6620_v6 = vpack.c.bf16 %v6009_v62, %v1119_v3 }
  0xf7   :  { %6164 = vmatmul.mubr.msk.f32.vlgmr.msra.gmra.mrb[26].mxu1 %vm71_vm0, %v7131_v14  ;;  %6047 = vmatprep.mubr.msk.f32.mxu0 %vm1280_vm1, %v669_v37  ;;  %v6016_v10 = vpop.f32.mrb[14].mxu0 }
  0xf8   :  { %6595 = vmatpush3.bf16.msra.mxu1 %v6592_v36  ;;  %6170 = vmatprep.mubr.msk.f32.mxu1 %vm71_vm0, %v7076_v2  ;;  %v1194_v15 = vpop.f32.mrb[15].mxu0  ;;  %v6023_v18 = vpop.f32.mrb[14].mxu1 }
  0xf9   :  { %6597 = vmatprep.subr.bf16.mxu1 %v6596_v42  ;;  %v6624_v19 = vpack.c.bf16 %v6016_v10, %v1194_v15  ;;  %v1269_v24 = vpop.f32.mrb[15].mxu1 }
  0xfa   :  { %6048 = vmatmul.mubr.msk.f32.gmra.mrb[30].mxu0 %vm1280_vm1, %v5967_v31  ;;  %v6628_v30 = vpack.c.bf16 %v6023_v18, %v1269_v24 }
  0xfb   :  { %6171 = vmatmul.mubr.msk.f32.vlgmr.msra.gmra.mrb[28].mxu1 %vm71_vm0, %v7131_v14  ;;  %6050 = vmatprep.mubr.msk.f32.mxu0 %vm1280_vm1, %v744_v48 }
  0xfc   :  { %6599 = vmatpush3.bf16.msra.mxu1 %v6596_v42  ;;  %6177 = vmatprep.mubr.msk.f32.mxu1 %vm71_vm0, %v7076_v2 }
  0xfd   :  { %6601 = vmatprep.subr.bf16.mxu1 %v6600_v50 }
  0xfe   :  { %6051 = vmatmul.mubr.msk.f32.gmra.mrb[32].mxu0 %vm1280_vm1, %v5974_v43 }
  0xff   :  { %6178 = vmatmul.mubr.msk.f32.vlgmr.msra.gmra.mrb[30].mxu1 %vm71_vm0, %v7131_v14  ;;  %6053 = vmatprep.mubr.msk.f32.mxu0 %vm1280_vm1, %v819_v51 }
 0x100   :  { %6603 = vmatpush3.bf16.msra.mxu1 %v6600_v50  ;;  %6184 = vmatprep.mubr.msk.f32.mxu1 %vm71_vm0, %v7076_v2 }
 0x101   :  { %6605 = vmatprep.subr.bf16.mxu1 %v6604_v52 }
 0x102   :  { %6054 = vmatmul.mubr.msk.f32.gmra.mrb[34].mxu0 %vm1280_vm1, %v5981_v49 }
 0x103   :  { %6185 = vmatmul.mubr.msk.f32.vlgmr.msra.gmra.mrb[32].mxu1 %vm71_vm0, %v7131_v14  ;;  %6056 = vmatprep.mubr.msk.f32.mxu0 %vm1280_vm1, %v894_v54 }
 0x104   :  { %6607 = vmatpush3.bf16.msra.mxu1 %v6604_v52  ;;  %6191 = vmatprep.mubr.msk.f32.mxu1 %vm71_vm0, %v7076_v2  ;;  %v5414_v52 = vld [vmem:[%s8638_s4 + $0x30] sm:$0xff] }
 0x105   :  { %6609 = vmatprep.subr.bf16.mxu1 %v6608_v56 }
 0x106   :  { %6057 = vmatmul.mubr.msk.f32.gmra.mrb[36].mxu0 %vm1280_vm1, %v5988_v53  ;;  %v5415_v53 = vld [vmem:[%s8638_s4 + $0x38] sm:$0xff] }
 0x107   :  { %6192 = vmatmul.mubr.msk.f32.vlgmr.msra.gmra.mrb[34].mxu1 %vm71_vm0, %v7131_v14  ;;  %6059 = vmatprep.mubr.msk.f32.mxu0 %vm1280_vm1, %v969_v57  ;;  %v6636_v54 = vpack.c.bf16 %v5415_v53, %v5414_v52 }
 0x108   :  { %6611 = vmatpush3.bf16.msra.mxu1 %v6608_v56  ;;  %6198 = vmatprep.mubr.msk.f32.mxu1 %vm71_vm0, %v7076_v2  ;;  %v5479_v56 = vld [vmem:[%s8638_s4 + $0x58] sm:$0xff] }
 0x109   :  { %6613 = vmatprep.subr.bf16.mxu1 %v6612_v59 }
 0x10a   :  { %6060 = vmatmul.mubr.msk.f32.gmra.mrb[38].mxu0 %vm1280_vm1, %v5995_v55  ;;  %v5478_v55 = vld [vmem:[%s8638_s4 + $0x50] sm:$0xff] }
 0x10b   :  { %6199 = vmatmul.mubr.msk.f32.vlgmr.msra.gmra.mrb[36].mxu1 %vm71_vm0, %v7131_v14  ;;  %6062 = vmatprep.mubr.msk.f32.mxu0 %vm1280_vm1, %v1044_v61  ;;  %v6652_v57 = vpack.c.bf16 %v5479_v56, %v5478_v55 }
 0x10c   :  { %6615 = vmatpush3.bf16.msra.mxu1 %v6612_v59  ;;  %6205 = vmatprep.mubr.msk.f32.mxu1 %vm71_vm0, %v7076_v2  ;;  %v7577_v59 = vld [vmem:[%s8640_s6] sm:$0xff] }
 0x10d   :  { %6617 = vmatprep.subr.bf16.mxu1 %v6616_v63 }
 0x10e   :  { %6063 = vmatmul.mubr.msk.f32.gmra.mrb[40].mxu0 %vm1280_vm1, %v6002_v60  ;;  %v7583_v60 = vld [vmem:[%s8637_s3] ss:$0 sm:$0xff] }
 0x10f   :  { %6206 = vmatmul.mubr.msk.f32.vlgmr.msra.gmra.mrb[38].mxu1 %vm71_vm0, %v7131_v14  ;;  %6065 = vmatprep.mubr.msk.f32.mxu0 %vm1280_vm1, %v1119_v3 }
 0x110   :  { %6619 = vmatpush3.bf16.msra.mxu1 %v6616_v63  ;;  %6212 = vmatprep.mubr.msk.f32.mxu1 %vm71_vm0, %v7076_v2 }
 0x111   :  { %6621 = vmatprep.subr.bf16.mxu1 %v6620_v6 }
 0x112   :  { %6066 = vmatmul.mubr.msk.f32.gmra.mrb[42].mxu0 %vm1280_vm1, %v6009_v62 }
 0x113   :  { %6213 = vmatmul.mubr.msk.f32.vlgmr.msra.gmra.mrb[40].mxu1 %vm71_vm0, %v7131_v14  ;;  %6068 = vmatprep.mubr.msk.f32.mxu0 %vm1280_vm1, %v1194_v15 }
 0x114   :  { %6623 = vmatpush3.bf16.msra.mxu1 %v6620_v6  ;;  %6219 = vmatprep.mubr.msk.f32.mxu1 %vm71_vm0, %v7076_v2 }
 0x115   :  { %6625 = vmatprep.subr.bf16.mxu1 %v6624_v19 }
 0x116   :  { %6069 = vmatmul.mubr.msk.f32.gmra.mrb[44].mxu0 %vm1280_vm1, %v6016_v10 }
 0x117   :  { %6220 = vmatmul.mubr.msk.f32.vlgmr.msra.gmra.mrb[42].mxu1 %vm71_vm0, %v7131_v14  ;;  %6071 = vmatprep.mubr.msk.f32.mxu0 %vm1280_vm1, %v1269_v24 }
 0x118   :  { %6627 = vmatpush3.bf16.msra.mxu1 %v6624_v19  ;;  %6226 = vmatprep.mubr.msk.f32.mxu1 %vm71_vm0, %v7076_v2 }
 0x119   :  { %6629 = vmatprep.subr.bf16.mxu1 %v6628_v30 }
 0x11a   :  { %6072 = vmatmul.mubr.msk.f32.gmra.mrb[46].mxu0 %vm1280_vm1, %v6023_v18 }
 0x11b   :  { %6227 = vmatmul.mubr.msk.f32.vlgmr.msra.gmra.mrb[44].mxu1 %vm71_vm0, %v7131_v14  ;;  %6076 = vmatprep.mubr.msk.f32.mxu0 %vm1280_vm1, %v7066_v0  ;;  %v3549_v0 = vld [vmem:[%s8638_s4] sm:$0xff] }
 0x11c   :  { %6631 = vmatpush3.bf16.msra.mxu1 %v6628_v30  ;;  %6233 = vmatprep.mubr.msk.f32.mxu1 %vm71_vm0, %v7076_v2  ;;  %v3551_v2 = vld [vmem:[%s8638_s4 + $0x10] sm:$0xff] }
 0x11e   :  { %6077 = vmatmul.mubr.msk.f32.vlgmr.msra.gmra.mrb[16].mxu0 %vm1280_vm1, %v7071_v1  ;;  %v3550_v1 = vld [vmem:[%s8638_s4 + $0x8] sm:$0xff] }
 0x11f   :  { %6234 = vmatmul.mubr.msk.f32.vlgmr.msra.gmra.mrb[46].mxu1 %vm71_vm0, %v7131_v14  ;;  %6237 = vmatpush3.msra.mxu0 %v7342_v58  ;;  %v5477_v14 = vld [vmem:[%s8638_s4 + $0x48] sm:$0xff] }
 0x120   :  { %6079 = vmatprep.mubr.msk.f32.mxu0 %vm1280_vm1, %v7085_v4  ;;  %v6640_v4 = vpack.c.bf16 %v3550_v1, %v3549_v0 }
 0x122   :  { %6080 = vmatmul.mubr.msk.f32.gmra.mrb[18].mxu0 %vm1280_vm1, %v7090_v5  ;;  %v3552_v5 = vld [vmem:[%s8638_s4 + $0x18] sm:$0xff]  ;;  %6641 = vmatprep.subr.bf16.mxu1 %v6640_v4 }
 0x123   :  { %6082 = vmatprep.mubr.msk.f32.mxu0 %vm1280_vm1, %v7099_v7  ;;  %v7004_v7 = vmov 0.0   ;;  %6643 = vmatpush3.bf16.msra.mxu1 %v6640_v4 }
 0x124   :  { %6350 = vmatprep.mubr.f32.mxu1 %v7004_v7 }
 0x126   :  { %6083 = vmatmul.mubr.msk.f32.gmra.mrb[20].mxu0 %vm1280_vm1, %v7104_v8  ;;  %v5412_v8 = vld [vmem:[%s8638_s4 + $0x20] sm:$0xff] }
 0x127   :  { %6085 = vmatprep.mubr.msk.f32.mxu0 %vm1280_vm1, %v7109_v9  ;;  %v5413_v9 = vld [vmem:[%s8638_s4 + $0x28] sm:$0xff] }
 0x12a   :  { %6086 = vmatmul.mubr.msk.f32.gmra.mrb[22].mxu0 %vm1280_vm1, %v7116_v11  ;;  %v6644_v11 = vpack.c.bf16 %v3552_v5, %v3551_v2 }
 0x12b   :  { %6088 = vmatprep.mubr.msk.f32.mxu0 %vm1280_vm1, %v7121_v12  ;;  %v6632_v12 = vpack.c.bf16 %v5413_v9, %v5412_v8 }
 0x12c   :  { %6645 = vmatprep.subr.bf16.mxu1 %v6644_v11 }
 0x12d   :  { %6633 = vmatprep.subr.bf16.mxu0 %v6632_v12  ;;  %6647 = vmatpush3.bf16.msra.mxu1 %v6644_v11 }
 0x12e   :  { %6089 = vmatmul.mubr.msk.f32.gmra.mrb[24].mxu0 %vm1280_vm1, %v7126_v13  ;;  %v5476_v13 = vld [vmem:[%s8638_s4 + $0x40] sm:$0xff] }
 0x12f   :  { %6091 = vmatprep.mubr.msk.f32.mxu0 %vm1280_vm1, %v7138_v16  ;;  %v6648_v16 = vpack.c.bf16 %v5477_v14, %v5476_v13 }
 0x130   :  { %6351 = vmatmul.mubr.f32.vlgmr.msra.gmra.mrb[48].mxu1 %v7004_v7 }
 0x131   :  { %6649 = vmatprep.subr.bf16.mxu1 %v6648_v16  ;;  %6353 = vmatprep.mubr.f32.mxu1 %v7004_v7 }
 0x132   :  { %6092 = vmatmul.mubr.msk.f32.gmra.mrb[26].mxu0 %vm1280_vm1, %v7143_v17  ;;  %6651 = vmatpush3.bf16.msra.mxu1 %v6648_v16 }
 0x133   :  { %6094 = vmatprep.mubr.msk.f32.mxu0 %vm1280_vm1, %v7154_v20  ;;  %6653 = vmatprep.subr.bf16.mxu1 %v6652_v57 }
 0x134   :  { %6354 = vmatmul.mubr.f32.gmra.mrb[50].mxu1 %v7004_v7 }
 0x136   :  { %6095 = vmatmul.mubr.msk.f32.gmra.mrb[28].mxu0 %vm1280_vm1, %v7159_v21  ;;  %6655 = vmatpush3.bf16.msra.mxu1 %v6652_v57 }
 0x137   :  { %6097 = vmatprep.mubr.msk.f32.mxu0 %vm1280_vm1, %v7166_v22  ;;  %6454 = vmatprep.subr.mxu1 %v7577_v59 }
 0x13a   :  { %6098 = vmatmul.mubr.msk.f32.gmra.mrb[30].mxu0 %vm1280_vm1, %v7171_v23 }
 0x13b   :  { %6100 = vmatprep.mubr.msk.f32.mxu0 %vm1280_vm1, %v7186_v26 }
 0x13e   :  { %6101 = vmatmul.mubr.msk.f32.gmra.mrb[32].mxu0 %vm1280_vm1, %v7191_v27 }
 0x13f   :  { %6103 = vmatprep.mubr.msk.f32.mxu0 %vm1280_vm1, %v7198_v28 }
 0x142   :  { %6104 = vmatmul.mubr.msk.f32.gmra.mrb[34].mxu0 %vm1280_vm1, %v7203_v29 }
 0x143   :  { %6106 = vmatprep.mubr.msk.f32.mxu0 %vm1280_vm1, %v7218_v32 }
 0x146   :  { %6107 = vmatmul.mubr.msk.f32.gmra.mrb[36].mxu0 %vm1280_vm1, %v7223_v33 }
 0x147   :  { %6109 = vmatprep.mubr.msk.f32.mxu0 %vm1280_vm1, %v7230_v34 }
 0x14a   :  { %6110 = vmatmul.mubr.msk.f32.gmra.mrb[38].mxu0 %vm1280_vm1, %v7235_v35 }
 0x14b   :  { %6112 = vmatprep.mubr.msk.f32.mxu0 %vm1280_vm1, %v7250_v38 }
 0x14e   :  { %6113 = vmatmul.mubr.msk.f32.gmra.mrb[40].mxu0 %vm1280_vm1, %v7255_v39 }
 0x14f   :  { %6115 = vmatprep.mubr.msk.f32.mxu0 %vm1280_vm1, %v7262_v40 }
 0x152   :  { %6116 = vmatmul.mubr.msk.f32.gmra.mrb[42].mxu0 %vm1280_vm1, %v7267_v41 }
 0x153   :  { %6118 = vmatprep.mubr.msk.f32.mxu0 %vm1280_vm1, %v7282_v44 }
 0x156   :  { %6119 = vmatmul.mubr.msk.f32.gmra.mrb[44].mxu0 %vm1280_vm1, %v7287_v45 }
 0x157   :  { %6121 = vmatprep.mubr.msk.f32.mxu0 %vm1280_vm1, %v7294_v46 }
 0x15a   :  { %6122 = vmatmul.mubr.msk.f32.gmra.mrb[46].mxu0 %vm1280_vm1, %v7299_v47 }
 0x1b6   :  { %v6130_v17 = vpop.f32.mrb[16].mxu1 }
 0x1b7   :  { %v1989_v20 = vpop.f32.mrb[17].mxu1 }
 0x1b8   :  { %6238 = vmatprep.mubr.msk.f32.mxu0 %vm1280_vm1, %v1989_v20 }
 0x1b9   :  { %6239 = vmatmul.mubr.msk.f32.vlgmr.msra.gmra.mrb[16].mxu0 %vm1280_vm1, %v6130_v17 }
 0x1ba   :  { %v6137_v21 = vpop.f32.mrb[18].mxu1  ;;  %6635 = vmatpush3.bf16.msra.mxu0 %v6632_v12 }
 0x1bb   :  { %v2064_v22 = vpop.f32.mrb[19].mxu1  ;;  %6637 = vmatprep.subr.bf16.mxu0 %v6636_v54 }
 0x1bc   :  { %6241 = vmatprep.mubr.msk.f32.mxu0 %vm1280_vm1, %v2064_v22 }
 0x1bd   :  { %6242 = vmatmul.mubr.msk.f32.gmra.mrb[18].mxu0 %vm1280_vm1, %v6137_v21 }
 0x1be   :  { %v6144_v23 = vpop.f32.mrb[20].mxu1  ;;  %6639 = vmatpush3.bf16.msra.mxu0 %v6636_v54 }
 0x1bf   :  { %v2139_v26 = vpop.f32.mrb[21].mxu1 }
 0x1c0   :  { %6244 = vmatprep.mubr.msk.f32.mxu0 %vm1280_vm1, %v2139_v26 }
 0x1c1   :  { %6245 = vmatmul.mubr.msk.f32.gmra.mrb[20].mxu0 %vm1280_vm1, %v6144_v23 }
 0x1c2   :  { %v6151_v27 = vpop.f32.mrb[22].mxu1 }
 0x1c3   :  { %v2214_v28 = vpop.f32.mrb[23].mxu1 }
 0x1c4   :  { %6247 = vmatprep.mubr.msk.f32.mxu0 %vm1280_vm1, %v2214_v28 }
 0x1c5   :  { %6248 = vmatmul.mubr.msk.f32.gmra.mrb[22].mxu0 %vm1280_vm1, %v6151_v27 }
 0x1c6   :  { %v6158_v29 = vpop.f32.mrb[24].mxu1 }
 0x1c7   :  { %v2289_v32 = vpop.f32.mrb[25].mxu1 }
 0x1c8   :  { %6250 = vmatprep.mubr.msk.f32.mxu0 %vm1280_vm1, %v2289_v32 }
 0x1c9   :  { %6251 = vmatmul.mubr.msk.f32.gmra.mrb[24].mxu0 %vm1280_vm1, %v6158_v29 }
 0x1ca   :  { %v6165_v33 = vpop.f32.mrb[26].mxu1 }
 0x1cb   :  { %v2364_v34 = vpop.f32.mrb[27].mxu1 }
 0x1cc   :  { %6253 = vmatprep.mubr.msk.f32.mxu0 %vm1280_vm1, %v2364_v34 }
 0x1cd   :  { %6254 = vmatmul.mubr.msk.f32.gmra.mrb[26].mxu0 %vm1280_vm1, %v6165_v33 }
 0x1ce   :  { %v6172_v35 = vpop.f32.mrb[28].mxu1 }
 0x1cf   :  { %v2439_v38 = vpop.f32.mrb[29].mxu1 }
 0x1d0   :  { %6256 = vmatprep.mubr.msk.f32.mxu0 %vm1280_vm1, %v2439_v38 }
 0x1d1   :  { %6257 = vmatmul.mubr.msk.f32.gmra.mrb[28].mxu0 %vm1280_vm1, %v6172_v35 }
 0x1d2   :  { %v6179_v39 = vpop.f32.mrb[30].mxu1 }
 0x1d3   :  { %v2514_v40 = vpop.f32.mrb[31].mxu1 }
 0x1d4   :  { %6259 = vmatprep.mubr.msk.f32.mxu0 %vm1280_vm1, %v2514_v40 }
 0x1d5   :  { %6260 = vmatmul.mubr.msk.f32.gmra.mrb[30].mxu0 %vm1280_vm1, %v6179_v39 }
 0x1d6   :  { %v6186_v41 = vpop.f32.mrb[32].mxu1 }
 0x1d7   :  { %v2589_v44 = vpop.f32.mrb[33].mxu1 }
 0x1d8   :  { %6262 = vmatprep.mubr.msk.f32.mxu0 %vm1280_vm1, %v2589_v44 }
 0x1d9   :  { %6263 = vmatmul.mubr.msk.f32.gmra.mrb[32].mxu0 %vm1280_vm1, %v6186_v41 }
 0x1da   :  { %v6193_v45 = vpop.f32.mrb[34].mxu1 }
 0x1db   :  { %v2664_v46 = vpop.f32.mrb[35].mxu1 }
 0x1dc   :  { %6265 = vmatprep.mubr.msk.f32.mxu0 %vm1280_vm1, %v2664_v46 }
 0x1dd   :  { %6266 = vmatmul.mubr.msk.f32.gmra.mrb[34].mxu0 %vm1280_vm1, %v6193_v45 }
 0x1de   :  { %v6200_v47 = vpop.f32.mrb[36].mxu1 }
 0x1df   :  { %v2739_v58 = vpop.f32.mrb[37].mxu1 }
 0x1e0   :  { %6268 = vmatprep.mubr.msk.f32.mxu0 %vm1280_vm1, %v2739_v58 }
 0x1e1   :  { %6269 = vmatmul.mubr.msk.f32.gmra.mrb[36].mxu0 %vm1280_vm1, %v6200_v47 }
 0x1e2   :  { %v6207_v25 = vpop.f32.mrb[38].mxu1 }
 0x1e3   :  { %v2814_v31 = vpop.f32.mrb[39].mxu1 }
 0x1e4   :  { %6271 = vmatprep.mubr.msk.f32.mxu0 %vm1280_vm1, %v2814_v31 }
 0x1e5   :  { %6272 = vmatmul.mubr.msk.f32.gmra.mrb[38].mxu0 %vm1280_vm1, %v6207_v25 }
 0x1e6   :  { %v6214_v36 = vpop.f32.mrb[40].mxu1 }
 0x1e7   :  { %v2889_v37 = vpop.f32.mrb[41].mxu1 }
 0x1e8   :  { %6274 = vmatprep.mubr.msk.f32.mxu0 %vm1280_vm1, %v2889_v37 }
 0x1e9   :  { %6275 = vmatmul.mubr.msk.f32.gmra.mrb[40].mxu0 %vm1280_vm1, %v6214_v36 }
 0x1ea   :  { %v6221_v42 = vpop.f32.mrb[42].mxu1 }
 0x1eb   :  { %v2964_v43 = vpop.f32.mrb[43].mxu1 }
 0x1ec   :  { %6277 = vmatprep.mubr.msk.f32.mxu0 %vm1280_vm1, %v2964_v43 }
 0x1ed   :  { %6278 = vmatmul.mubr.msk.f32.gmra.mrb[42].mxu0 %vm1280_vm1, %v6221_v42 }
 0x1ee   :  { %v6228_v48 = vpop.f32.mrb[44].mxu1 }
 0x1ef   :  { %v3039_v49 = vpop.f32.mrb[45].mxu1 }
 0x1f0   :  { %6280 = vmatprep.mubr.msk.f32.mxu0 %vm1280_vm1, %v3039_v49 }
 0x1f1   :  { %6281 = vmatmul.mubr.msk.f32.gmra.mrb[44].mxu0 %vm1280_vm1, %v6228_v48 }
 0x1f2   :  { %v6235_v50 = vpop.f32.mrb[46].mxu1 }
 0x1f3   :  { %v3114_v51 = vpop.f32.mrb[47].mxu1 }
 0x1f4   :  { %6283 = vmatprep.mubr.msk.f32.mxu0 %vm1280_vm1, %v3114_v51 }
 0x1f5   :  { %6284 = vmatmul.mubr.msk.f32.gmra.mrb[46].mxu0 %vm1280_vm1, %v6235_v50 }
 0x28c   :  { %v6240_v61 = vpop.f32.mrb[16].mxu0 }
 0x28d   :  { %v3486_v62 = vadd.f32 %v6240_v61, %v7583_v60  ;;  %v3287_v63 = vpop.f32.mrb[17].mxu0 }
 0x28e   :  { %v3485_v3 = vadd.f32 %v7583_v60, %v3287_v63 }
 0x28f   :  { %v3518_v15 = vmax.f32 %v3486_v62, 0.0 }
 0x290   :  { %v3517_v6 = vmax.f32 %v3485_v3, 0.0  ;;  %v6243_v10 = vpop.f32.mrb[18].mxu0 }
 0x291   :  { %v3488_v18 = vadd.f32 %v6243_v10, %v7583_v60  ;;  %v3297_v19 = vpop.f32.mrb[19].mxu0 }
 0x292   :  { %v3487_v24 = vadd.f32 %v7583_v60, %v3297_v19  ;;  %6294 = vmatprep.mubr.msk.f32.mxu0 %vm3558_vm2, %v3517_v6  ;;  %6356 = vmatprep.mubr.msk.f32.mxu1 %vm3558_vm2, %v3517_v6 }
 0x293   :  { %6295 = vmatmul.mubr.msk.f32.vlgmr.msra.gmra.mrb[48].mxu0 %vm3558_vm2, %v3518_v15  ;;  %6357 = vmatmul.mubr.msk.f32.gmra.mrb[52].mxu1 %vm3558_vm2, %v3518_v15  ;;  %v3520_v1 = vmax.f32 %v3488_v18, 0.0 }
 0x294   :  { %v3519_v30 = vmax.f32 %v3487_v24, 0.0  ;;  %v6246_v0 = vpop.f32.mrb[20].mxu0 }
 0x295   :  { %v3490_v2 = vadd.f32 %v6246_v0, %v7583_v60  ;;  %v3307_v4 = vpop.f32.mrb[21].mxu0 }
 0x296   :  { %v3489_v5 = vadd.f32 %v7583_v60, %v3307_v4  ;;  %6297 = vmatprep.mubr.msk.f32.mxu0 %vm3558_vm2, %v3519_v30  ;;  %6359 = vmatprep.mubr.msk.f32.mxu1 %vm3558_vm2, %v3519_v30 }
 0x297   :  { %6298 = vmatmul.mubr.msk.f32.gmra.mrb[50].mxu0 %vm3558_vm2, %v3520_v1  ;;  %6360 = vmatmul.mubr.msk.f32.gmra.mrb[54].mxu1 %vm3558_vm2, %v3520_v1  ;;  %v7601_v11 = vmax.f32 %v3490_v2, 0.0 }
 0x298   :  { %v7599_v8 = vmax.f32 %v3489_v5, 0.0  ;;  %v6249_v9 = vpop.f32.mrb[22].mxu0 }
 0x299   :  { %v3492_v12 = vadd.f32 %v6249_v9, %v7583_v60  ;;  %v3317_v13 = vpop.f32.mrb[23].mxu0 }
 0x29a   :  { %v3491_v14 = vadd.f32 %v7583_v60, %v3317_v13  ;;  %6300 = vmatprep.mubr.msk.f32.mxu0 %vm3558_vm2, %v7599_v8  ;;  %6362 = vmatprep.mubr.msk.f32.mxu1 %vm3558_vm2, %v7599_v8 }
 0x29b   :  { %6301 = vmatmul.mubr.msk.f32.gmra.mrb[52].mxu0 %vm3558_vm2, %v7601_v11  ;;  %6363 = vmatmul.mubr.msk.f32.gmra.mrb[56].mxu1 %vm3558_vm2, %v7601_v11  ;;  %v7615_v20 = vmax.f32 %v3492_v12, 0.0 }
 0x29c   :  { %v7613_v16 = vmax.f32 %v3491_v14, 0.0  ;;  %v6252_v17 = vpop.f32.mrb[24].mxu0 }
 0x29d   :  { %v3494_v21 = vadd.f32 %v6252_v17, %v7583_v60  ;;  %v3327_v22 = vpop.f32.mrb[25].mxu0 }
 0x29e   :  { %v3493_v23 = vadd.f32 %v7583_v60, %v3327_v22  ;;  %6303 = vmatprep.mubr.msk.f32.mxu0 %vm3558_vm2, %v7613_v16  ;;  %6365 = vmatprep.mubr.msk.f32.mxu1 %vm3558_vm2, %v7613_v16 }
 0x29f   :  { %6304 = vmatmul.mubr.msk.f32.gmra.mrb[54].mxu0 %vm3558_vm2, %v7615_v20  ;;  %6366 = vmatmul.mubr.msk.f32.gmra.mrb[58].mxu1 %vm3558_vm2, %v7615_v20  ;;  %v7629_v28 = vmax.f32 %v3494_v21, 0.0 }
 0x2a0   :  { %v7627_v26 = vmax.f32 %v3493_v23, 0.0  ;;  %v6255_v27 = vpop.f32.mrb[26].mxu0 }
 0x2a1   :  { %v3496_v29 = vadd.f32 %v6255_v27, %v7583_v60  ;;  %v3337_v32 = vpop.f32.mrb[27].mxu0 }
 0x2a2   :  { %v3495_v33 = vadd.f32 %v7583_v60, %v3337_v32  ;;  %6306 = vmatprep.mubr.msk.f32.mxu0 %vm3558_vm2, %v7627_v26  ;;  %6368 = vmatprep.mubr.msk.f32.mxu1 %vm3558_vm2, %v7627_v26 }
 0x2a3   :  { %6307 = vmatmul.mubr.msk.f32.gmra.mrb[56].mxu0 %vm3558_vm2, %v7629_v28  ;;  %6369 = vmatmul.mubr.msk.f32.gmra.mrb[60].mxu1 %vm3558_vm2, %v7629_v28  ;;  %v7643_v38 = vmax.f32 %v3496_v29, 0.0 }
 0x2a4   :  { %v7641_v34 = vmax.f32 %v3495_v33, 0.0  ;;  %v6258_v35 = vpop.f32.mrb[28].mxu0 }
 0x2a5   :  { %v3498_v39 = vadd.f32 %v6258_v35, %v7583_v60  ;;  %v3347_v40 = vpop.f32.mrb[29].mxu0 }
 0x2a6   :  { %v3497_v41 = vadd.f32 %v7583_v60, %v3347_v40  ;;  %6309 = vmatprep.mubr.msk.f32.mxu0 %vm3558_vm2, %v7641_v34  ;;  %6371 = vmatprep.mubr.msk.f32.mxu1 %vm3558_vm2, %v7641_v34 }
 0x2a7   :  { %6310 = vmatmul.mubr.msk.f32.gmra.mrb[58].mxu0 %vm3558_vm2, %v7643_v38  ;;  %6372 = vmatmul.mubr.msk.f32.gmra.mrb[62].mxu1 %vm3558_vm2, %v7643_v38  ;;  %v7657_v46 = vmax.f32 %v3498_v39, 0.0 }
 0x2a8   :  { %v7655_v44 = vmax.f32 %v3497_v41, 0.0  ;;  %v6261_v45 = vpop.f32.mrb[30].mxu0 }
 0x2a9   :  { %v3500_v47 = vadd.f32 %v6261_v45, %v7583_v60  ;;  %v3357_v58 = vpop.f32.mrb[31].mxu0 }
 0x2aa   :  { %v3499_v25 = vadd.f32 %v7583_v60, %v3357_v58  ;;  %6312 = vmatprep.mubr.msk.f32.mxu0 %vm3558_vm2, %v7655_v44  ;;  %6374 = vmatprep.mubr.msk.f32.mxu1 %vm3558_vm2, %v7655_v44  ;;  %v6960_v58 = vld [vmem:[%s8634_s0 + $0x60] sm:$0xff] }
 0x2ab   :  { %6313 = vmatmul.mubr.msk.f32.gmra.mrb[60].mxu0 %vm3558_vm2, %v7657_v46  ;;  %6375 = vmatmul.mubr.msk.f32.gmra.mrb[64].mxu1 %vm3558_vm2, %v7657_v46  ;;  %v7671_v37 = vmax.f32 %v3500_v47, 0.0 }
 0x2ac   :  { %v7669_v31 = vmax.f32 %v3499_v25, 0.0  ;;  %v6264_v36 = vpop.f32.mrb[32].mxu0  ;;  %v6961_v25 = vld [vmem:[%s8634_s0 + $0x68] sm:$0xff] }
 0x2ad   :  { %v3502_v42 = vadd.f32 %v6264_v36, %v7583_v60  ;;  %v3367_v43 = vpop.f32.mrb[33].mxu0  ;;  %v6963_v36 = vld [vmem:[%s8634_s0 + $0x78] sm:$0xff] }
 0x2ae   :  { %v3501_v48 = vadd.f32 %v7583_v60, %v3367_v43  ;;  %6315 = vmatprep.mubr.msk.f32.mxu0 %vm3558_vm2, %v7669_v31  ;;  %6377 = vmatprep.mubr.msk.f32.mxu1 %vm3558_vm2, %v7669_v31  ;;  %v6966_v43 = vld [vmem:[%s8634_s0 + $0x90] sm:$0xff] }
 0x2af   :  { %6316 = vmatmul.mubr.msk.f32.gmra.mrb[62].mxu0 %vm3558_vm2, %v7671_v37  ;;  %6378 = vmatmul.mubr.msk.f32.gmra.mrb[66].mxu1 %vm3558_vm2, %v7671_v37  ;;  %v7685_v51 = vmax.f32 %v3502_v42, 0.0  ;;  %v6965_v42 = vld [vmem:[%s8634_s0 + $0x88] sm:$0xff] }
 0x2b0   :  { %v7683_v49 = vmax.f32 %v3501_v48, 0.0  ;;  %v6267_v50 = vpop.f32.mrb[34].mxu0  ;;  %v6967_v48 = vld [vmem:[%s8634_s0 + $0x98] sm:$0xff] }
 0x2b1   :  { %v3504_v52 = vadd.f32 %v6267_v50, %v7583_v60  ;;  %v3377_v53 = vpop.f32.mrb[35].mxu0  ;;  %v6969_v50 = vld [vmem:[%s8634_s0 + $0xa8] sm:$0xff] }
 0x2b2   :  { %v3503_v54 = vadd.f32 %v7583_v60, %v3377_v53  ;;  %6318 = vmatprep.mubr.msk.f32.mxu0 %vm3558_vm2, %v7683_v49  ;;  %6380 = vmatprep.mubr.msk.f32.mxu1 %vm3558_vm2, %v7683_v49  ;;  %v6972_v53 = vld [vmem:[%s8634_s0 + $0xc0] sm:$0xff] }
 0x2b3   :  { %6319 = vmatmul.mubr.msk.f32.gmra.mrb[64].mxu0 %vm3558_vm2, %v7685_v51  ;;  %6381 = vmatmul.mubr.msk.f32.gmra.mrb[68].mxu1 %vm3558_vm2, %v7685_v51  ;;  %v7699_v57 = vmax.f32 %v3504_v52, 0.0  ;;  %v6971_v52 = vld [vmem:[%s8634_s0 + $0xb8] sm:$0xff] }
 0x2b4   :  { %v7697_v55 = vmax.f32 %v3503_v54, 0.0  ;;  %v6270_v56 = vpop.f32.mrb[36].mxu0  ;;  %v6973_v54 = vld [vmem:[%s8634_s0 + $0xc8] sm:$0xff] }
 0x2b5   :  { %v3506_v61 = vadd.f32 %v6270_v56, %v7583_v60  ;;  %v3387_v62 = vpop.f32.mrb[37].mxu0  ;;  %v6975_v56 = vld [vmem:[%s8634_s0 + $0xd8] sm:$0xff] }
 0x2b6   :  { %v3505_v63 = vadd.f32 %v7583_v60, %v3387_v62  ;;  %6321 = vmatprep.mubr.msk.f32.mxu0 %vm3558_vm2, %v7697_v55  ;;  %6383 = vmatprep.mubr.msk.f32.mxu1 %vm3558_vm2, %v7697_v55  ;;  %v6978_v62 = vld [vmem:[%s8634_s0 + $0xf0] sm:$0xff] }
 0x2b7   :  { %6322 = vmatmul.mubr.msk.f32.gmra.mrb[66].mxu0 %vm3558_vm2, %v7699_v57  ;;  %6384 = vmatmul.mubr.msk.f32.gmra.mrb[70].mxu1 %vm3558_vm2, %v7699_v57  ;;  %v7713_v10 = vmax.f32 %v3506_v61, 0.0  ;;  %v6977_v61 = vld [vmem:[%s8634_s0 + $0xe8] sm:$0xff] }
 0x2b8   :  { %v7711_v3 = vmax.f32 %v3505_v63, 0.0  ;;  %v6273_v6 = vpop.f32.mrb[38].mxu0  ;;  %v6979_v63 = vld [vmem:[%s8634_s0 + $0xf8] sm:$0xff] }
 0x2b9   :  { %v3508_v15 = vadd.f32 %v6273_v6, %v7583_v60  ;;  %v3397_v18 = vpop.f32.mrb[39].mxu0 }
 0x2ba   :  { %v3507_v19 = vadd.f32 %v7583_v60, %v3397_v18  ;;  %6324 = vmatprep.mubr.msk.f32.mxu0 %vm3558_vm2, %v7711_v3  ;;  %6386 = vmatprep.mubr.msk.f32.mxu1 %vm3558_vm2, %v7711_v3 }
 0x2bb   :  { %6325 = vmatmul.mubr.msk.f32.gmra.mrb[68].mxu0 %vm3558_vm2, %v7713_v10  ;;  %6387 = vmatmul.mubr.msk.f32.gmra.mrb[72].mxu1 %vm3558_vm2, %v7713_v10  ;;  %v3540_v0 = vmax.f32 %v3508_v15, 0.0 }
 0x2bc   :  { %v3539_v24 = vmax.f32 %v3507_v19, 0.0  ;;  %v6276_v30 = vpop.f32.mrb[40].mxu0 }
 0x2bd   :  { %v3510_v1 = vadd.f32 %v6276_v30, %v7583_v60  ;;  %v3407_v2 = vpop.f32.mrb[41].mxu0 }
 0x2be   :  { %v3509_v4 = vadd.f32 %v7583_v60, %v3407_v2  ;;  %6327 = vmatprep.mubr.msk.f32.mxu0 %vm3558_vm2, %v3539_v24  ;;  %6389 = vmatprep.mubr.msk.f32.mxu1 %vm3558_vm2, %v3539_v24 }
 0x2bf   :  { %6328 = vmatmul.mubr.msk.f32.gmra.mrb[70].mxu0 %vm3558_vm2, %v3540_v0  ;;  %6390 = vmatmul.mubr.msk.f32.gmra.mrb[74].mxu1 %vm3558_vm2, %v3540_v0  ;;  %v3542_v12 = vmax.f32 %v3510_v1, 0.0 }
 0x2c0   :  { %v3541_v5 = vmax.f32 %v3509_v4, 0.0  ;;  %v6279_v9 = vpop.f32.mrb[42].mxu0 }
 0x2c1   :  { %v3512_v13 = vadd.f32 %v6279_v9, %v7583_v60  ;;  %v3417_v14 = vpop.f32.mrb[43].mxu0 }
 0x2c2   :  { %v3511_v17 = vadd.f32 %v7583_v60, %v3417_v14  ;;  %6330 = vmatprep.mubr.msk.f32.mxu0 %vm3558_vm2, %v3541_v5  ;;  %6392 = vmatprep.mubr.msk.f32.mxu1 %vm3558_vm2, %v3541_v5 }
 0x2c3   :  { %6331 = vmatmul.mubr.msk.f32.gmra.mrb[72].mxu0 %vm3558_vm2, %v3542_v12  ;;  %6393 = vmatmul.mubr.msk.f32.gmra.mrb[76].mxu1 %vm3558_vm2, %v3542_v12  ;;  %v3544_v23 = vmax.f32 %v3512_v13, 0.0 }
 0x2c4   :  { %v3543_v21 = vmax.f32 %v3511_v17, 0.0  ;;  %v6282_v22 = vpop.f32.mrb[44].mxu0 }
 0x2c5   :  { %v3514_v27 = vadd.f32 %v6282_v22, %v7583_v60  ;;  %v3427_v29 = vpop.f32.mrb[45].mxu0 }
 0x2c6   :  { %v3513_v32 = vadd.f32 %v7583_v60, %v3427_v29  ;;  %6333 = vmatprep.mubr.msk.f32.mxu0 %vm3558_vm2, %v3543_v21  ;;  %6395 = vmatprep.mubr.msk.f32.mxu1 %vm3558_vm2, %v3543_v21 }
 0x2c7   :  { %6334 = vmatmul.mubr.msk.f32.gmra.mrb[74].mxu0 %vm3558_vm2, %v3544_v23  ;;  %6396 = vmatmul.mubr.msk.f32.gmra.mrb[78].mxu1 %vm3558_vm2, %v3544_v23  ;;  %v3546_v39 = vmax.f32 %v3514_v27, 0.0 }
 0x2c8   :  { %v3545_v33 = vmax.f32 %v3513_v32, 0.0  ;;  %v6285_v35 = vpop.f32.mrb[46].mxu0  ;;  %6406 = vmatprep.mubr.msk.f32.mxu1 %vm3558_vm2, %v7599_v8 }
 0x2c9   :  { %v3516_v40 = vadd.f32 %v6285_v35, %v7583_v60  ;;  %v3437_v41 = vpop.f32.mrb[47].mxu0 }
 0x2ca   :  { %v3515_v45 = vadd.f32 %v7583_v60, %v3437_v41  ;;  %6336 = vmatprep.mubr.msk.f32.mxu0 %vm3558_vm2, %v3545_v33  ;;  %v6949_v60 = vld [vmem:[%s8634_s0 + $0x8] sm:$0xff] }
 0x2cb   :  { %6337 = vmatmul.mubr.msk.f32.gmra.mrb[76].mxu0 %vm3558_vm2, %v3546_v39  ;;  %6407 = vmatmul.mubr.msk.f32.vlgmr.msra.gmra.mrb[48].mxu1 %vm3558_vm2, %v7601_v11  ;;  %v3548_v8 = vmax.f32 %v3516_v40, 0.0  ;;  %v6950_v11 = vld [vmem:[%s8634_s0 + $0x10] sm:$0xff] }
 0x2cc   :  { %v3547_v47 = vmax.f32 %v3515_v45, 0.0  ;;  %6409 = vmatprep.mubr.msk.f32.mxu1 %vm3558_vm2, %v7613_v16  ;;  %6455 = vmatpush3.msra.mxu1 %v7577_v59  ;;  %v6948_v59 = vld [vmem:[%s8634_s0] sm:$0xff] }
 0x2cd   :  { %v6952_v16 = vld [vmem:[%s8634_s0 + $0x20] sm:$0xff] }
 0x2ce   :  { %6339 = vmatprep.mubr.msk.f32.mxu0 %vm3558_vm2, %v3547_v47 }
 0x2cf   :  { %6340 = vmatmul.mubr.msk.f32.gmra.mrb[78].mxu0 %vm3558_vm2, %v3548_v8  ;;  %6410 = vmatmul.mubr.msk.f32.gmra.mrb[50].mxu1 %vm3558_vm2, %v7615_v20  ;;  %v6953_v20 = vld [vmem:[%s8634_s0 + $0x28] sm:$0xff] }
 0x2d0   :  { %6412 = vmatprep.mubr.msk.f32.mxu1 %vm3558_vm2, %v7627_v26  ;;  %v6954_v26 = vld [vmem:[%s8634_s0 + $0x30] sm:$0xff] }
 0x2d3   :  { %6413 = vmatmul.mubr.msk.f32.gmra.mrb[52].mxu1 %vm3558_vm2, %v7629_v28  ;;  %v6955_v28 = vld [vmem:[%s8634_s0 + $0x38] sm:$0xff] }
 0x2d4   :  { %6415 = vmatprep.mubr.msk.f32.mxu1 %vm3558_vm2, %v7641_v34  ;;  %v6956_v34 = vld [vmem:[%s8634_s0 + $0x40] sm:$0xff] }
 0x2d7   :  { %6416 = vmatmul.mubr.msk.f32.gmra.mrb[54].mxu1 %vm3558_vm2, %v7643_v38  ;;  %v6957_v38 = vld [vmem:[%s8634_s0 + $0x48] sm:$0xff] }
 0x2d8   :  { %6418 = vmatprep.mubr.msk.f32.mxu1 %vm3558_vm2, %v7655_v44  ;;  %v6958_v44 = vld [vmem:[%s8634_s0 + $0x50] sm:$0xff] }
 0x2db   :  { %6419 = vmatmul.mubr.msk.f32.gmra.mrb[56].mxu1 %vm3558_vm2, %v7657_v46  ;;  %v6959_v46 = vld [vmem:[%s8634_s0 + $0x58] sm:$0xff] }
 0x2dc   :  { %6421 = vmatprep.mubr.msk.f32.mxu1 %vm3558_vm2, %v7669_v31  ;;  %v6962_v31 = vld [vmem:[%s8634_s0 + $0x70] sm:$0xff] }
 0x2df   :  { %6422 = vmatmul.mubr.msk.f32.gmra.mrb[58].mxu1 %vm3558_vm2, %v7671_v37  ;;  %v6964_v37 = vld [vmem:[%s8634_s0 + $0x80] sm:$0xff] }
 0x2e0   :  { %6424 = vmatprep.mubr.msk.f32.mxu1 %vm3558_vm2, %v7683_v49  ;;  %v6968_v49 = vld [vmem:[%s8634_s0 + $0xa0] sm:$0xff] }
 0x2e3   :  { %6425 = vmatmul.mubr.msk.f32.gmra.mrb[60].mxu1 %vm3558_vm2, %v7685_v51  ;;  %v6970_v51 = vld [vmem:[%s8634_s0 + $0xb0] sm:$0xff] }
 0x2e4   :  { %6427 = vmatprep.mubr.msk.f32.mxu1 %vm3558_vm2, %v7697_v55  ;;  %v6974_v55 = vld [vmem:[%s8634_s0 + $0xd0] sm:$0xff] }
 0x2e7   :  { %6428 = vmatmul.mubr.msk.f32.gmra.mrb[62].mxu1 %vm3558_vm2, %v7699_v57  ;;  %v6976_v57 = vld [vmem:[%s8634_s0 + $0xe0] sm:$0xff] }
 0x2e8   :  { %6430 = vmatprep.mubr.msk.f32.mxu1 %vm3558_vm2, %v7711_v3 }
 0x2eb   :  { %6431 = vmatmul.mubr.msk.f32.gmra.mrb[64].mxu1 %vm3558_vm2, %v7713_v10 }
 0x2ec   :  { %6433 = vmatprep.mubr.msk.f32.mxu1 %vm3558_vm2, %v3539_v24 }
 0x2ef   :  { %6434 = vmatmul.mubr.msk.f32.gmra.mrb[66].mxu1 %vm3558_vm2, %v3540_v0 }
 0x2f0   :  { %6436 = vmatprep.mubr.msk.f32.mxu1 %vm3558_vm2, %v3541_v5 }
 0x2f3   :  { %6437 = vmatmul.mubr.msk.f32.gmra.mrb[68].mxu1 %vm3558_vm2, %v3542_v12 }
 0x2f4   :  { %6439 = vmatprep.mubr.msk.f32.mxu1 %vm3558_vm2, %v3543_v21 }
 0x2f7   :  { %6440 = vmatmul.mubr.msk.f32.gmra.mrb[70].mxu1 %vm3558_vm2, %v3544_v23 }
 0x2f8   :  { %6442 = vmatprep.mubr.msk.f32.mxu1 %vm3558_vm2, %v3545_v33 }
 0x2fb   :  { %6443 = vmatmul.mubr.msk.f32.gmra.mrb[72].mxu1 %vm3558_vm2, %v3546_v39 }
 0x2fc   :  { %6445 = vmatprep.mubr.msk.f32.mxu1 %vm3558_vm2, %v3547_v47 }
 0x2ff   :  { %6446 = vmatmul.mubr.msk.f32.gmra.mrb[74].mxu1 %vm3558_vm2, %v3548_v8 }
 0x300   :  { %6448 = vmatprep.mubr.f32.mxu1 %v7004_v7 }
 0x303   :  { %6449 = vmatmul.mubr.f32.gmra.mrb[76].mxu1 %v7004_v7 }
 0x304   :  { %6451 = vmatprep.mubr.f32.mxu1 %v7004_v7 }
 0x307   :  { %6452 = vmatmul.mubr.f32.gmra.mrb[78].mxu1 %v7004_v7  ;;  %v6951_v7 = vld [vmem:[%s8634_s0 + $0x18] sm:$0xff] }
 0x308   :  { %6456 = vmatprep.mubr.msk.f32.mxu1 %vm1280_vm1, %v6948_v59  ;;  %v7975_v59 = vld [vmem:[%s8639_s5] ss:$0 sm:$0xff] }
 0x30b   :  { %6457 = vmatmul.mubr.msk.f32.vlgmr.msra.gmra.mrb[48].mxu1 %vm1280_vm1, %v6949_v60 }
 0x30c   :  { %6459 = vmatprep.mubr.msk.f32.mxu1 %vm1280_vm1, %v6950_v11 }
 0x30f   :  { %6460 = vmatmul.mubr.msk.f32.gmra.mrb[50].mxu1 %vm1280_vm1, %v6951_v7 }
 0x310   :  { %6462 = vmatprep.mubr.msk.f32.mxu1 %vm1280_vm1, %v6952_v16 }
 0x313   :  { %6463 = vmatmul.mubr.msk.f32.gmra.mrb[52].mxu1 %vm1280_vm1, %v6953_v20 }
 0x314   :  { %6465 = vmatprep.mubr.msk.f32.mxu1 %vm1280_vm1, %v6954_v26  ;;  %v7984_v26 = vld [vmem:[%s8641_s7] ss:$0 sm:$0xff] }
 0x317   :  { %6466 = vmatmul.mubr.msk.f32.gmra.mrb[54].mxu1 %vm1280_vm1, %v6955_v28 }
 0x318   :  { %6468 = vmatprep.mubr.msk.f32.mxu1 %vm1280_vm1, %v6956_v34 }
 0x31b   :  { %6469 = vmatmul.mubr.msk.f32.gmra.mrb[56].mxu1 %vm1280_vm1, %v6957_v38 }
 0x31c   :  { %6471 = vmatprep.mubr.msk.f32.mxu1 %vm1280_vm1, %v6958_v44 }
 0x31f   :  { %6472 = vmatmul.mubr.msk.f32.gmra.mrb[58].mxu1 %vm1280_vm1, %v6959_v46 }
 0x320   :  { %6474 = vmatprep.mubr.msk.f32.mxu1 %vm1280_vm1, %v6960_v58 }
 0x323   :  { %6475 = vmatmul.mubr.msk.f32.gmra.mrb[60].mxu1 %vm1280_vm1, %v6961_v25 }
 0x324   :  { %6477 = vmatprep.mubr.msk.f32.mxu1 %vm1280_vm1, %v6962_v31 }
 0x327   :  { %6478 = vmatmul.mubr.msk.f32.gmra.mrb[62].mxu1 %vm1280_vm1, %v6963_v36 }
 0x328   :  { %6480 = vmatprep.mubr.msk.f32.mxu1 %vm1280_vm1, %v6964_v37 }
 0x32b   :  { %6481 = vmatmul.mubr.msk.f32.gmra.mrb[64].mxu1 %vm1280_vm1, %v6965_v42 }
 0x32c   :  { %6483 = vmatprep.mubr.msk.f32.mxu1 %vm1280_vm1, %v6966_v43 }
 0x32f   :  { %6484 = vmatmul.mubr.msk.f32.gmra.mrb[66].mxu1 %vm1280_vm1, %v6967_v48 }
 0x330   :  { %6486 = vmatprep.mubr.msk.f32.mxu1 %vm1280_vm1, %v6968_v49 }
 0x333   :  { %6487 = vmatmul.mubr.msk.f32.gmra.mrb[68].mxu1 %vm1280_vm1, %v6969_v50 }
 0x334   :  { %6489 = vmatprep.mubr.msk.f32.mxu1 %vm1280_vm1, %v6970_v51 }
 0x337   :  { %6490 = vmatmul.mubr.msk.f32.gmra.mrb[70].mxu1 %vm1280_vm1, %v6971_v52 }
 0x338   :  { %6492 = vmatprep.mubr.msk.f32.mxu1 %vm1280_vm1, %v6972_v53 }
 0x33b   :  { %6493 = vmatmul.mubr.msk.f32.gmra.mrb[72].mxu1 %vm1280_vm1, %v6973_v54 }
 0x33c   :  { %6495 = vmatprep.mubr.msk.f32.mxu1 %vm1280_vm1, %v6974_v55 }
 0x33f   :  { %6496 = vmatmul.mubr.msk.f32.gmra.mrb[74].mxu1 %vm1280_vm1, %v6975_v56 }
 0x340   :  { %6498 = vmatprep.mubr.msk.f32.mxu1 %vm1280_vm1, %v6976_v57 }
 0x343   :  { %6499 = vmatmul.mubr.msk.f32.gmra.mrb[76].mxu1 %vm1280_vm1, %v6977_v61 }
 0x344   :  { %6501 = vmatprep.mubr.msk.f32.mxu1 %vm1280_vm1, %v6978_v62 }
 0x347   :  { %6502 = vmatmul.mubr.msk.f32.gmra.mrb[78].mxu1 %vm1280_vm1, %v6979_v63 }
 0x366   :  { %v6296_v3 = vpop.f32.mrb[48].mxu0 }
 0x367   :  { %v3721_v6 = vpop.f32.mrb[49].mxu0  ;;  %v6656_v60 = vadd.f32 %v6296_v3, %v7975_v59 }
 0x368   :  { %v6659_v7 = vadd.f32 %v7975_v59, %v3721_v6 }
 0x36a   :  { %v6299_v10 = vpop.f32.mrb[50].mxu0 }
 0x36b   :  { %v3731_v15 = vpop.f32.mrb[51].mxu0  ;;  %v6662_v11 = vadd.f32 %v6299_v10, %v7975_v59 }
 0x36c   :  { %v6665_v16 = vadd.f32 %v7975_v59, %v3731_v15 }
 0x36d   :  { %v6663_v46 = vadd.f32 %v6662_v11, %v7984_v26 }
 0x36e   :  { %v6302_v18 = vpop.f32.mrb[52].mxu0  ;;  %v6666_v37 = vadd.f32 %v6665_v16, %v7984_v26 }
 0x36f   :  { %v3741_v19 = vpop.f32.mrb[53].mxu0  ;;  %v6668_v38 = vadd.f32 %v6302_v18, %v7975_v59 }
 0x370   :  { %v6671_v25 = vadd.f32 %v7975_v59, %v3741_v19 }
 0x371   :  { %v6669_v50 = vadd.f32 %v6668_v38, %v7984_v26 }
 0x372   :  { %v6305_v24 = vpop.f32.mrb[54].mxu0  ;;  %v6672_v57 = vadd.f32 %v6671_v25, %v7984_v26 }
 0x373   :  { %v3751_v30 = vpop.f32.mrb[55].mxu0  ;;  %v6674_v51 = vadd.f32 %v6305_v24, %v7975_v59 }
 0x374   :  { %v6677_v55 = vadd.f32 %v7975_v59, %v3751_v30 }
 0x375   :  { %v6675_v18 = vadd.f32 %v6674_v51, %v7984_v26 }
 0x376   :  { %v6308_v0 = vpop.f32.mrb[56].mxu0 }
 0x377   :  { %v3761_v1 = vpop.f32.mrb[57].mxu0  ;;  %v6680_v10 = vadd.f32 %v6308_v0, %v7975_v59 }
 0x378   :  { %v6683_v19 = vadd.f32 %v7975_v59, %v3761_v1 }
 0x37a   :  { %v7928_v2 = vpop.f32.mrb[58].mxu0  ;;  %v6684_v25 = vadd.f32 %v6683_v19, %v7984_v26 }
 0x37b   :  { %v7930_v4 = vpop.f32.mrb[59].mxu0 }
 0x37c   :  { %v6689_v38 = vadd.f32 %v7975_v59, %v7930_v4 }
 0x37e   :  { %v7932_v5 = vpop.f32.mrb[60].mxu0 }
 0x37f   :  { %v7934_v9 = vpop.f32.mrb[61].mxu0  ;;  %v6692_v51 = vadd.f32 %v7932_v5, %v7975_v59 }
 0x382   :  { %v7936_v12 = vpop.f32.mrb[62].mxu0 }
 0x383   :  { %v7938_v13 = vpop.f32.mrb[63].mxu0  ;;  %v6698_v19 = vadd.f32 %v7936_v12, %v7975_v59 }
 0x386   :  { %v7940_v14 = vpop.f32.mrb[64].mxu0 }
 0x387   :  { %v7942_v17 = vpop.f32.mrb[65].mxu0 }
 0x38a   :  { %v7944_v21 = vpop.f32.mrb[66].mxu0 }
 0x38b   :  { %v7946_v22 = vpop.f32.mrb[67].mxu0 }
 0x38e   :  { %v7948_v23 = vpop.f32.mrb[68].mxu0 }
 0x38f   :  { %v7950_v27 = vpop.f32.mrb[69].mxu0 }
 0x392   :  { %v7952_v29 = vpop.f32.mrb[70].mxu0 }
 0x393   :  { %v7954_v32 = vpop.f32.mrb[71].mxu0 }
 0x396   :  { %v7956_v33 = vpop.f32.mrb[72].mxu0 }
 0x397   :  { %v7958_v35 = vpop.f32.mrb[73].mxu0 }
 0x39a   :  { %v7960_v39 = vpop.f32.mrb[74].mxu0 }
 0x39b   :  { %v7962_v40 = vpop.f32.mrb[75].mxu0 }
 0x39e   :  { %v7964_v41 = vpop.f32.mrb[76].mxu0 }
 0x39f   :  { %v7966_v45 = vpop.f32.mrb[77].mxu0 }
 0x3a2   :  { %v7968_v47 = vpop.f32.mrb[78].mxu0 }
 0x3a3   :  { %v7970_v8 = vpop.f32.mrb[79].mxu0 }
 0x3de   :  { %v6458_v20 = vpop.f32.mrb[48].mxu1 }
 0x3df   :  { %v6657_v28 = vadd.f32 %v6656_v60, %v6458_v20  ;;  %v4483_v34 = vpop.f32.mrb[49].mxu1  ;;  %v6678_v60 = vadd.f32 %v6677_v55, %v7984_v26  ;;  %v6695_v55 = vadd.f32 %v7975_v59, %v7934_v9 }
 0x3e0   :  { %v6660_v44 = vadd.f32 %v6659_v7, %v4483_v34  ;;  %v6681_v34 = vadd.f32 %v6680_v10, %v7984_v26 }
 0x3e1   :  { %v7989_v58 = vadd.f32 %v6657_v28, %v7984_v26  ;;  %v6686_v28 = vadd.f32 %v7928_v2, %v7975_v59 }
 0x3e2   :  { %v7993_v31 = vadd.f32 %v6660_v44, %v7984_v26  ;;  %v6461_v36 = vpop.f32.mrb[50].mxu1 }
 0x3e3   :  { %v7996_v42 = vadd.f32 %v6663_v46, %v6461_v36  ;;  %v4493_v43 = vpop.f32.mrb[51].mxu1  ;;  %v4675_v48 = vmax.f32 %v7989_v58, 0.0 }
 0x3e4   :  { %v7999_v49 = vadd.f32 %v6666_v37, %v4493_v43  ;;  %v4674_v54 = vmax.f32 %v7993_v31, 0.0 }
 0x3e5   :  { %v4677_v52 = vmax.f32 %v7996_v42, 0.0  ;;  %v4709_v53 = vsel %vm3558_vm2, %v4675_v48, 0.0 }
 0x3e6   :  { %4710 = vadd.xlane.f32.xlu0 %v4709_v53  ;;  %v6464_v56 = vpop.f32.mrb[52].mxu1  ;;  %v4676_v61 = vmax.f32 %v7999_v49, 0.0  ;;  %v4706_v15 = vsel %vm3558_vm2, %v4674_v54, 0.0  ;;  %v6687_v53 = vadd.f32 %v6686_v28, %v7984_v26 }
 0x3e7   :  { %v8011_v62 = vadd.f32 %v6669_v50, %v6464_v56  ;;  %v4503_v63 = vpop.f32.mrb[53].mxu1  ;;  %v4715_v3 = vsel %vm3558_vm2, %v4677_v52, 0.0 }
 0x3e8   :  { %v8016_v6 = vadd.f32 %v6672_v57, %v4503_v63  ;;  %4716 = vadd.xlane.f32.xlu1 %v4715_v3  ;;  %v4712_v0 = vsel %vm3558_vm2, %v4676_v61, 0.0  ;;  %v6690_v63 = vadd.f32 %v6689_v38, %v7984_v26 }
 0x3e9   :  { %v4679_v11 = vmax.f32 %v8011_v62, 0.0 }
 0x3ea   :  { %v4678_v24 = vmax.f32 %v8016_v6, 0.0  ;;  %4707 = vadd.xlane.f32.xlu0 %v4706_v15  ;;  %v6467_v30 = vpop.f32.mrb[54].mxu1 }
 0x3eb   :  { %v8027_v7 = vadd.f32 %v6675_v18, %v6467_v30  ;;  %v4513_v16 = vpop.f32.mrb[55].mxu1  ;;  %v4721_v2 = vsel %vm3558_vm2, %v4679_v11, 0.0  ;;  %v6693_v30 = vadd.f32 %v6692_v51, %v7984_v26 }
 0x3ec   :  { %v8032_v20 = vadd.f32 %v6678_v60, %v4513_v16  ;;  %4713 = vadd.xlane.f32.xlu1 %v4712_v0  ;;  %v4718_v1 = vsel %vm3558_vm2, %v4678_v24, 0.0  ;;  %v6701_v60 = vadd.f32 %v7975_v59, %v7938_v13 }
 0x3ed   :  { %v4681_v36 = vmax.f32 %v8027_v7, 0.0 }
 0x3ee   :  { %v4680_v44 = vmax.f32 %v8032_v20, 0.0  ;;  %4719 = vadd.xlane.f32.xlu0 %v4718_v1  ;;  %v6470_v46 = vpop.f32.mrb[56].mxu1  ;;  %v6696_v1 = vadd.f32 %v6695_v55, %v7984_v26 }
 0x3ef   :  { %v8045_v37 = vadd.f32 %v6681_v34, %v6470_v46  ;;  %v4523_v43 = vpop.f32.mrb[57].mxu1  ;;  %v4727_v5 = vsel %vm3558_vm2, %v4681_v36, 0.0 }
 0x3f0   :  { %v8050_v50 = vadd.f32 %v6684_v25, %v4523_v43  ;;  %4722 = vadd.xlane.f32.xlu1 %v4721_v2  ;;  %v4724_v4 = vsel %vm3558_vm2, %v4680_v44, 0.0  ;;  %v6704_v25 = vadd.f32 %v7940_v14, %v7975_v59  ;;  %v6699_v43 = vadd.f32 %v6698_v19, %v7984_v26 }
 0x3f1   :  { %v4683_v3 = vmax.f32 %v8045_v37, 0.0  ;;  %v6707_v2 = vadd.f32 %v7975_v59, %v7942_v17  ;;  %v6713_v19 = vadd.f32 %v7975_v59, %v7946_v22 }
 0x3f2   :  { %v4682_v56 = vmax.f32 %v8050_v50, 0.0  ;;  %4725 = vadd.xlane.f32.xlu0 %v4724_v4  ;;  %v6473_v57 = vpop.f32.mrb[58].mxu1 }
 0x3f3   :  { %v8063_v10 = vadd.f32 %v6687_v53, %v6473_v57  ;;  %v4533_v15 = vpop.f32.mrb[59].mxu1  ;;  %v4733_v12 = vsel %vm3558_vm2, %v4683_v3, 0.0  ;;  %v6702_v53 = vadd.f32 %v6701_v60, %v7984_v26 }
 0x3f4   :  { %v8068_v18 = vadd.f32 %v6690_v63, %v4533_v15  ;;  %4728 = vadd.xlane.f32.xlu1 %v4727_v5  ;;  %v4730_v9 = vsel %vm3558_vm2, %v4682_v56, 0.0  ;;  %v6710_v5 = vadd.f32 %v7944_v21, %v7975_v59 }
 0x3f5   :  { %v4685_v28 = vmax.f32 %v8063_v10, 0.0 }
 0x3f6   :  { %v4684_v16 = vmax.f32 %v8068_v18, 0.0  ;;  %4731 = vadd.xlane.f32.xlu0 %v4730_v9  ;;  %v6476_v0 = vpop.f32.mrb[60].mxu1  ;;  %v6705_v9 = vadd.f32 %v6704_v25, %v7984_v26  ;;  %v6716_v25 = vadd.f32 %v7948_v23, %v7975_v59 }
 0x3f7   :  { %v8081_v34 = vadd.f32 %v6693_v30, %v6476_v0  ;;  %v4543_v38 = vpop.f32.mrb[61].mxu1  ;;  %v4739_v14 = vsel %vm3558_vm2, %v4685_v28, 0.0  ;;  %v6708_v0 = vadd.f32 %v6707_v2, %v7984_v26  ;;  %v6719_v2 = vadd.f32 %v7975_v59, %v7950_v27 }
 0x3f8   :  { %v8086_v46 = vadd.f32 %v6696_v1, %v4543_v38  ;;  %4734 = vadd.xlane.f32.xlu1 %v4733_v12  ;;  %v4736_v13 = vsel %vm3558_vm2, %v4684_v16, 0.0 }
 0x3f9   :  { %v4687_v55 = vmax.f32 %v8081_v34, 0.0 }
 0x3fa   :  { %v4686_v4 = vmax.f32 %v8086_v46, 0.0  ;;  %4737 = vadd.xlane.f32.xlu0 %v4736_v13  ;;  %v6479_v51 = vpop.f32.mrb[62].mxu1 }
 0x3fb   :  { %v8099_v57 = vadd.f32 %v6699_v43, %v6479_v51  ;;  %v4553_v63 = vpop.f32.mrb[63].mxu1  ;;  %v4745_v21 = vsel %vm3558_vm2, %v4687_v55, 0.0  ;;  %v6711_v43 = vadd.f32 %v6710_v5, %v7984_v26  ;;  %v6722_v5 = vadd.f32 %v7952_v29, %v7975_v59 }
 0x3fc   :  { %v8104_v15 = vadd.f32 %v6702_v53, %v4553_v63  ;;  %4740 = vadd.xlane.f32.xlu1 %v4739_v14  ;;  %v4742_v17 = vsel %vm3558_vm2, %v4686_v4, 0.0  ;;  %v6714_v63 = vadd.f32 %v6713_v19, %v7984_v26  ;;  %v6717_v19 = vadd.f32 %v6716_v25, %v7984_v26 }
 0x3fd   :  { %v4689_v1 = vmax.f32 %v8099_v57, 0.0  ;;  %v6728_v25 = vadd.f32 %v7956_v33, %v7975_v59 }
 0x3fe   :  { %v4688_v30 = vmax.f32 %v8104_v15, 0.0  ;;  %4743 = vadd.xlane.f32.xlu0 %v4742_v17  ;;  %v6482_v60 = vpop.f32.mrb[64].mxu1 }
 0x3ff   :  { %v8117_v38 = vadd.f32 %v6705_v9, %v6482_v60  ;;  %v4563_v12 = vpop.f32.mrb[65].mxu1  ;;  %v4751_v23 = vsel %vm3558_vm2, %v4689_v1, 0.0 }
 0x400   :  { %v8122_v13 = vadd.f32 %v6708_v0, %v4563_v12  ;;  %4746 = vadd.xlane.f32.xlu1 %v4745_v21  ;;  %v4748_v22 = vsel %vm3558_vm2, %v4688_v30, 0.0  ;;  %v6725_v0 = vadd.f32 %v7975_v59, %v7954_v32 }
 0x401   :  { %v4691_v14 = vmax.f32 %v8117_v38, 0.0 }
 0x402   :  { %v4690_v51 = vmax.f32 %v8122_v13, 0.0  ;;  %4749 = vadd.xlane.f32.xlu0 %v4748_v22  ;;  %v6485_v53 = vpop.f32.mrb[66].mxu1  ;;  %v6720_v22 = vadd.f32 %v6719_v2, %v7984_v26  ;;  %v6723_v2 = vadd.f32 %v6722_v5, %v7984_v26  ;;  %v6734_v5 = vadd.f32 %v7960_v39, %v7975_v59 }
 0x403   :  { %v8135_v17 = vadd.f32 %v6711_v43, %v6485_v53  ;;  %v4573_v9 = vpop.f32.mrb[67].mxu1  ;;  %v4757_v29 = vsel %vm3558_vm2, %v4691_v14, 0.0 }
 0x404   :  { %v8140_v60 = vadd.f32 %v6714_v63, %v4573_v9  ;;  %4752 = vadd.xlane.f32.xlu1 %v4751_v23  ;;  %v4754_v27 = vsel %vm3558_vm2, %v4690_v51, 0.0  ;;  %v6731_v23 = vadd.f32 %v7975_v59, %v7958_v35 }
 0x405   :  { %v8646_v43 = vmax.f32 %v8135_v17, 0.0 }
 0x406   :  { %v8645_v12 = vmax.f32 %v8140_v60, 0.0  ;;  %4755 = vadd.xlane.f32.xlu0 %v4754_v27  ;;  %v6488_v21 = vpop.f32.mrb[68].mxu1 }
 0x407   :  { %v8153_v53 = vadd.f32 %v6717_v19, %v6488_v21  ;;  %v4583_v63 = vpop.f32.mrb[69].mxu1  ;;  %v6726_v21 = vadd.f32 %v6725_v0, %v7984_v26  ;;  %v4763_v33 = vsel %vm3558_vm2, %v8646_v43, 0.0  ;;  %v6729_v0 = vadd.f32 %v6728_v25, %v7984_v26 }
 0x408   :  { %v8158_v9 = vadd.f32 %v6720_v22, %v4583_v63  ;;  %4758 = vadd.xlane.f32.xlu1 %v4757_v29  ;;  %v4760_v32 = vsel %vm3558_vm2, %v8645_v12, 0.0  ;;  %v6740_v25 = vadd.f32 %v7964_v41, %v7975_v59 }
 0x409   :  { %v8648_v22 = vmax.f32 %v8153_v53, 0.0 }
 0x40a   :  { %v8647_v27 = vmax.f32 %v8158_v9, 0.0  ;;  %4761 = vadd.xlane.f32.xlu0 %v4760_v32  ;;  %v6491_v19 = vpop.f32.mrb[70].mxu1  ;;  %v6737_v32 = vadd.f32 %v7975_v59, %v7962_v40 }
 0x40b   :  { %v8171_v63 = vadd.f32 %v6723_v2, %v6491_v19  ;;  %v4593_v29 = vpop.f32.mrb[71].mxu1  ;;  %v4769_v39 = vsel %vm3558_vm2, %v8648_v22, 0.0 }
 0x40c   :  { %v8176_v12 = vadd.f32 %v6726_v21, %v4593_v29  ;;  %4764 = vadd.xlane.f32.xlu1 %v4763_v33  ;;  %v4766_v35 = vsel %vm3558_vm2, %v8647_v27, 0.0  ;;  %v6732_v21 = vadd.f32 %v6731_v23, %v7984_v26  ;;  %v6735_v23 = vadd.f32 %v6734_v5, %v7984_v26 }
 0x40d   :  { %v8650_v29 = vmax.f32 %v8171_v63, 0.0  ;;  %v6746_v5 = vadd.f32 %v7968_v47, %v7975_v59 }
 0x40e   :  { %v8649_v2 = vmax.f32 %v8176_v12, 0.0  ;;  %4767 = vadd.xlane.f32.xlu0 %v4766_v35  ;;  %v6494_v19 = vpop.f32.mrb[72].mxu1  ;;  %v6743_v35 = vadd.f32 %v7975_v59, %v7966_v45 }
 0x40f   :  { %v8189_v33 = vadd.f32 %v6729_v0, %v6494_v19  ;;  %v4603_v43 = vpop.f32.mrb[73].mxu1  ;;  %v4775_v41 = vsel %vm3558_vm2, %v8650_v29, 0.0 }
 0x410   :  { %v8194_v27 = vadd.f32 %v6732_v21, %v4603_v43  ;;  %4770 = vadd.xlane.f32.xlu1 %v4769_v39  ;;  %v4772_v40 = vsel %vm3558_vm2, %v8649_v2, 0.0  ;;  %v6738_v43 = vadd.f32 %v6737_v32, %v7984_v26  ;;  %v6741_v32 = vadd.f32 %v6740_v25, %v7984_v26 }
 0x411   :  { %v8652_v21 = vmax.f32 %v8189_v33, 0.0 }
 0x412   :  { %v8651_v0 = vmax.f32 %v8194_v27, 0.0  ;;  %4773 = vadd.xlane.f32.xlu0 %v4772_v40  ;;  %v6497_v19 = vpop.f32.mrb[74].mxu1  ;;  %v6749_v40 = vadd.f32 %v7975_v59, %v7970_v8  ;;  %v6747_v59 = vadd.f32 %v6746_v5, %v7984_v26 }
 0x413   :  { %v8207_v39 = vadd.f32 %v6735_v23, %v6497_v19  ;;  %v4613_v22 = vpop.f32.mrb[75].mxu1  ;;  %v4781_v47 = vsel %vm3558_vm2, %v8652_v21, 0.0 }
 0x414   :  { %v8212_v2 = vadd.f32 %v6738_v43, %v4613_v22  ;;  %4776 = vadd.xlane.f32.xlu1 %v4775_v41  ;;  %v4778_v45 = vsel %vm3558_vm2, %v8651_v0, 0.0  ;;  %v6744_v22 = vadd.f32 %v6743_v35, %v7984_v26 }
 0x415   :  { %v4701_v43 = vmax.f32 %v8207_v39, 0.0 }
 0x416   :  { %v4700_v23 = vmax.f32 %v8212_v2, 0.0  ;;  %4779 = vadd.xlane.f32.xlu0 %v4778_v45  ;;  %v6500_v19 = vpop.f32.mrb[76].mxu1  ;;  %v6750_v45 = vadd.f32 %v6749_v40, %v7984_v26 }
 0x417   :  { %v8225_v41 = vadd.f32 %v6741_v32, %v6500_v19  ;;  %v4623_v29 = vpop.f32.mrb[77].mxu1 }
 0x418   :  { %v8230_v0 = vadd.f32 %v6744_v22, %v4623_v29  ;;  %4782 = vadd.xlane.f32.xlu1 %v4781_v47  ;;  %v4784_v8 = vsel %vm3558_vm2, %v4700_v23, 0.0  ;;  %v4787_v29 = vsel %vm3558_vm2, %v4701_v43, 0.0 }
 0x419   :  { %v8653_v32 = vmax.f32 %v8225_v41, 0.0 }
 0x41a   :  { %v8655_v25 = vmax.f32 %v8230_v0, 0.0  ;;  %4785 = vadd.xlane.f32.xlu0 %v4784_v8  ;;  %v6503_v35 = vpop.f32.mrb[78].mxu1 }
 0x41b   :  { %v8239_v19 = vadd.f32 %v6747_v59, %v6503_v35  ;;  %v4633_v21 = vpop.f32.mrb[79].mxu1  ;;  %v4793_v40 = vsel %vm3558_vm2, %v8653_v32, 0.0 }
 0x41c   :  { %v8244_v22 = vadd.f32 %v6750_v45, %v4633_v21  ;;  %4788 = vadd.xlane.f32.xlu1 %v4787_v29  ;;  %v4790_v5 = vsel %vm3558_vm2, %v8655_v25, 0.0 }
 0x41d   :  { %v4705_v26 = vmax.f32 %v8239_v19, 0.0 }
 0x41e   :  { %v8654_v47 = vmax.f32 %v8244_v22, 0.0  ;;  %4791 = vadd.xlane.f32.xlu0 %v4790_v5 }
 0x41f   :  { %v4799_v8 = vsel %vm3558_vm2, %v4705_v26, 0.0 }
 0x420   :  { %4794 = vadd.xlane.f32.xlu1 %v4793_v40  ;;  %v4796_v21 = vsel %vm3558_vm2, %v8654_v47, 0.0 }
 0x422   :  { %4797 = vadd.xlane.f32.xlu0 %v4796_v21 }
 0x424   :  { %4800 = vadd.xlane.f32.xlu1 %v4799_v8 }
 0x473   :  { %v4711_v59 = vpop.xlane.xlu0 %4710 }
 0x474   :  { %v4804_v35 = vmul.f32 0.03125, %v4711_v59 }
 0x475   :  { %v4717_v45 = vpop.xlane.xlu1 %4716 }
 0x476   :  { %v8262_v29 = vsub.f32 %v4675_v48, %v4804_v35  ;;  %v4806_v5 = vmul.f32 0.03125, %v4717_v45 }
 0x477   :  { %v4708_v32 = vpop.xlane.xlu0 %4707 }
 0x478   :  { %v8266_v40 = vsub.f32 %v4677_v52, %v4806_v5  ;;  %v4803_v47 = vmul.f32 0.03125, %v4708_v32  ;;  %v4868_v21 = vmul.f32 %v8262_v29, %v8262_v29 }
 0x479   :  { %v4714_v25 = vpop.xlane.xlu1 %4713 }
 0x47a   :  { %v8272_v8 = vsub.f32 %v4674_v54, %v4803_v47  ;;  %v4805_v59 = vmul.f32 0.03125, %v4714_v25  ;;  %v4902_v58 = vsel %vm3558_vm2, %v4868_v21, 0.0  ;;  %v4870_v48 = vmul.f32 %v8266_v40, %v8266_v40 }
 0x47b   :  { %v4720_v35 = vpop.xlane.xlu0 %4719  ;;  %4903 = vadd.xlane.f32.xlu1 %v4902_v58 }
 0x47c   :  { %v8279_v42 = vsub.f32 %v4676_v61, %v4805_v59  ;;  %v4807_v52 = vmul.f32 0.03125, %v4720_v35  ;;  %v4867_v32 = vmul.f32 %v8272_v8, %v8272_v8  ;;  %v4908_v31 = vsel %vm3558_vm2, %v4870_v48, 0.0 }
 0x47d   :  { %v4723_v45 = vpop.xlane.xlu1 %4722 }
 0x47e   :  { %v8286_v54 = vsub.f32 %v4678_v24, %v4807_v52  ;;  %v4808_v25 = vmul.f32 0.03125, %v4723_v45  ;;  %v4899_v47 = vsel %vm3558_vm2, %v4867_v32, 0.0  ;;  %v4869_v5 = vmul.f32 %v8279_v42, %v8279_v42 }
 0x47f   :  { %v4726_v49 = vpop.xlane.xlu0 %4725  ;;  %4909 = vadd.xlane.f32.xlu1 %v4908_v31  ;;  %4900 = vadd.xlane.f32.xlu0 %v4899_v47 }
 0x480   :  { %v8293_v61 = vsub.f32 %v4679_v11, %v4808_v25  ;;  %v4809_v21 = vmul.f32 0.03125, %v4726_v49  ;;  %v4905_v58 = vsel %vm3558_vm2, %v4869_v5, 0.0  ;;  %v4871_v35 = vmul.f32 %v8286_v54, %v8286_v54 }
 0x481   :  { %v4729_v59 = vpop.xlane.xlu1 %4728 }
 0x482   :  { %v8298_v6 = vsub.f32 %v4680_v44, %v4809_v21  ;;  %v4810_v24 = vmul.f32 0.03125, %v4729_v59  ;;  %v4872_v48 = vmul.f32 %v8293_v61, %v8293_v61  ;;  %v4911_v25 = vsel %vm3558_vm2, %v4871_v35, 0.0 }
 0x483   :  { %v4732_v52 = vpop.xlane.xlu0 %4731  ;;  %4906 = vadd.xlane.f32.xlu0 %v4905_v58 }
 0x484   :  { %v8306_v62 = vsub.f32 %v4681_v36, %v4810_v24  ;;  %v4811_v11 = vmul.f32 0.03125, %v4732_v52  ;;  %v4914_v32 = vsel %vm3558_vm2, %v4872_v48, 0.0  ;;  %v4873_v20 = vmul.f32 %v8298_v6, %v8298_v6 }
 0x485   :  { %v4735_v45 = vpop.xlane.xlu1 %4734  ;;  %4915 = vadd.xlane.f32.xlu1 %v4914_v32 }
 0x486   :  { %v8313_v44 = vsub.f32 %v4682_v56, %v4811_v11  ;;  %v4812_v31 = vmul.f32 0.03125, %v4735_v45  ;;  %v4874_v7 = vmul.f32 %v8306_v62, %v8306_v62  ;;  %v4917_v50 = vsel %vm3558_vm2, %v4873_v20, 0.0 }
 0x487   :  { %v4738_v36 = vpop.xlane.xlu0 %4737  ;;  %4912 = vadd.xlane.f32.xlu0 %v4911_v25 }
 0x488   :  { %v8320_v47 = vsub.f32 %v4683_v3, %v4812_v31  ;;  %v4813_v5 = vmul.f32 0.03125, %v4738_v36  ;;  %v4920_v49 = vsel %vm3558_vm2, %v4874_v7, 0.0  ;;  %v4875_v37 = vmul.f32 %v8313_v44, %v8313_v44 }
 0x489   :  { %v4741_v21 = vpop.xlane.xlu1 %4740  ;;  %4921 = vadd.xlane.f32.xlu1 %v4920_v49 }
 0x48a   :  { %v8326_v56 = vsub.f32 %v4684_v16, %v4813_v5  ;;  %v4814_v59 = vmul.f32 0.03125, %v4741_v21  ;;  %v4876_v58 = vmul.f32 %v8320_v47, %v8320_v47  ;;  %v4923_v32 = vsel %vm3558_vm2, %v4875_v37, 0.0 }
 0x48b   :  { %v4744_v3 = vpop.xlane.xlu0 %4743  ;;  %4918 = vadd.xlane.f32.xlu0 %v4917_v50 }
 0x48c   :  { %v8334_v24 = vsub.f32 %v4685_v28, %v4814_v59  ;;  %v4815_v48 = vmul.f32 0.03125, %v4744_v3  ;;  %v4926_v35 = vsel %vm3558_vm2, %v4876_v58, 0.0  ;;  %v4877_v18 = vmul.f32 %v8326_v56, %v8326_v56 }
 0x48d   :  { %v4747_v52 = vpop.xlane.xlu1 %4746  ;;  %4927 = vadd.xlane.f32.xlu1 %v4926_v35 }
 0x48e   :  { %v8341_v16 = vsub.f32 %v4686_v4, %v4815_v48  ;;  %v4816_v11 = vmul.f32 0.03125, %v4747_v52  ;;  %v4878_v10 = vmul.f32 %v8334_v24, %v8334_v24  ;;  %v4929_v46 = vsel %vm3558_vm2, %v4877_v18, 0.0 }
 0x48f   :  { %v4750_v28 = vpop.xlane.xlu0 %4749  ;;  %4924 = vadd.xlane.f32.xlu0 %v4923_v32  ;;  %v8657_v32 = vmax.f32 %v8135_v17, 0.0 }
 0x490   :  { %v8348_v45 = vsub.f32 %v4687_v55, %v4816_v11  ;;  %v4817_v20 = vmul.f32 0.03125, %v4750_v28  ;;  %v4932_v31 = vsel %vm3558_vm2, %v4878_v10, 0.0  ;;  %v4879_v34 = vmul.f32 %v8341_v16, %v8341_v16 }
 0x491   :  { %v4753_v25 = vpop.xlane.xlu1 %4752  ;;  %4933 = vadd.xlane.f32.xlu1 %v4932_v31 }
 0x492   :  { %v8354_v4 = vsub.f32 %v4688_v30, %v4817_v20  ;;  %v4818_v7 = vmul.f32 0.03125, %v4753_v25  ;;  %v4880_v36 = vmul.f32 %v8348_v45, %v8348_v45  ;;  %v4935_v58 = vsel %vm3558_vm2, %v4879_v34, 0.0 }
 0x493   :  { %v4756_v55 = vpop.xlane.xlu0 %4755  ;;  %4930 = vadd.xlane.f32.xlu0 %v4929_v46  ;;  %v8658_v25 = vmax.f32 %v8158_v9, 0.0 }
 0x494   :  { %v8362_v5 = vsub.f32 %v4689_v1, %v4818_v7  ;;  %v4819_v49 = vmul.f32 0.03125, %v4756_v55  ;;  %v4938_v21 = vsel %vm3558_vm2, %v4880_v36, 0.0  ;;  %v4881_v15 = vmul.f32 %v8354_v4, %v8354_v4 }
 0x495   :  { %v4759_v50 = vpop.xlane.xlu1 %4758  ;;  %4939 = vadd.xlane.f32.xlu1 %v4938_v21  ;;  %v8659_v55 = vmax.f32 %v8153_v53, 0.0 }
 0x496   :  { %v8369_v30 = vsub.f32 %v4690_v51, %v4819_v49  ;;  %v4820_v59 = vmul.f32 0.03125, %v4759_v50  ;;  %v4882_v57 = vmul.f32 %v8362_v5, %v8362_v5  ;;  %v4941_v13 = vsel %vm3558_vm2, %v4881_v15, 0.0 }
 0x497   :  { %v4762_v1 = vpop.xlane.xlu0 %4761  ;;  %4936 = vadd.xlane.f32.xlu0 %v4935_v58  ;;  %v8656_v51 = vmax.f32 %v8140_v60, 0.0 }
 0x498   :  { %v8376_v37 = vsub.f32 %v4691_v14, %v4820_v59  ;;  %v4821_v3 = vmul.f32 0.03125, %v4762_v1  ;;  %v4944_v48 = vsel %vm3558_vm2, %v4882_v57, 0.0  ;;  %v4883_v38 = vmul.f32 %v8369_v30, %v8369_v30 }
 0x499   :  { %v4765_v35 = vpop.xlane.xlu1 %4764  ;;  %4945 = vadd.xlane.f32.xlu1 %v4944_v48  ;;  %v8660_v59 = vmax.f32 %v8176_v12, 0.0  ;;  %v8661_v48 = vmax.f32 %v8171_v63, 0.0 }
 0x49a   :  { %v8382_v52 = vsub.f32 %v8656_v51, %v4821_v3  ;;  %v4822_v18 = vmul.f32 0.03125, %v4765_v35  ;;  %v4884_v11 = vmul.f32 %v8376_v37, %v8376_v37  ;;  %v4947_v36 = vsel %vm3558_vm2, %v4883_v38, 0.0 }
 0x49b   :  { %v4768_v14 = vpop.xlane.xlu0 %4767  ;;  %4942 = vadd.xlane.f32.xlu0 %v4941_v13 }
 0x49c   :  { %v8390_v10 = vsub.f32 %v8657_v32, %v4822_v18  ;;  %v4823_v28 = vmul.f32 0.03125, %v4768_v14  ;;  %v4950_v20 = vsel %vm3558_vm2, %v4884_v11, 0.0  ;;  %v4885_v60 = vmul.f32 %v8382_v52, %v8382_v52 }
 0x49d   :  { %v4771_v31 = vpop.xlane.xlu1 %4770  ;;  %4951 = vadd.xlane.f32.xlu1 %v4950_v20  ;;  %v8662_v11 = vmax.f32 %v8194_v27, 0.0  ;;  %v8663_v20 = vmax.f32 %v8189_v33, 0.0 }
 0x49e   :  { %v8397_v46 = vsub.f32 %v8658_v25, %v4823_v28  ;;  %v4824_v7 = vmul.f32 0.03125, %v4771_v31  ;;  %v4886_v17 = vmul.f32 %v8390_v10, %v8390_v10  ;;  %v4953_v9 = vsel %vm3558_vm2, %v4885_v60, 0.0 }
 0x49f   :  { %v4774_v34 = vpop.xlane.xlu0 %4773  ;;  %4948 = vadd.xlane.f32.xlu0 %v4947_v36 }
 0x4a0   :  { %v8404_v49 = vsub.f32 %v8659_v55, %v4824_v7  ;;  %v4825_v21 = vmul.f32 0.03125, %v4774_v34  ;;  %v4956_v50 = vsel %vm3558_vm2, %v4886_v17, 0.0  ;;  %v4887_v53 = vmul.f32 %v8397_v46, %v8397_v46 }
 0x4a1   :  { %v4777_v15 = vpop.xlane.xlu1 %4776  ;;  %4957 = vadd.xlane.f32.xlu1 %v4956_v50 }
 0x4a2   :  { %v8410_v58 = vsub.f32 %v8660_v59, %v4825_v21  ;;  %v4826_v57 = vmul.f32 0.03125, %v4777_v15  ;;  %v4888_v1 = vmul.f32 %v8404_v49, %v8404_v49  ;;  %v4959_v32 = vsel %vm3558_vm2, %v4887_v53, 0.0 }
 0x4a3   :  { %v4780_v3 = vpop.xlane.xlu0 %4779  ;;  %4954 = vadd.xlane.f32.xlu0 %v4953_v9  ;;  %v8665_v53 = vmax.f32 %v8225_v41, 0.0 }
 0x4a4   :  { %v8418_v35 = vsub.f32 %v8661_v48, %v4826_v57  ;;  %v4827_v13 = vmul.f32 0.03125, %v4780_v3  ;;  %v4962_v51 = vsel %vm3558_vm2, %v4888_v1, 0.0  ;;  %v4889_v12 = vmul.f32 %v8410_v58, %v8410_v58 }
 0x4a5   :  { %v4783_v18 = vpop.xlane.xlu1 %4782  ;;  %4963 = vadd.xlane.f32.xlu1 %v4962_v51 }
 0x4a6   :  { %v8425_v38 = vsub.f32 %v8662_v11, %v4827_v13  ;;  %v4828_v14 = vmul.f32 0.03125, %v4783_v18  ;;  %v4890_v63 = vmul.f32 %v8418_v35, %v8418_v35  ;;  %v4965_v27 = vsel %vm3558_vm2, %v4889_v12, 0.0 }
 0x4a7   :  { %v4786_v28 = vpop.xlane.xlu0 %4785  ;;  %4960 = vadd.xlane.f32.xlu0 %v4959_v32  ;;  %v8666_v18 = vmax.f32 %v8244_v22, 0.0 }
 0x4a8   :  { %v8432_v31 = vsub.f32 %v8663_v20, %v4828_v14  ;;  %v4829_v60 = vmul.f32 0.03125, %v4786_v28  ;;  %v4968_v25 = vsel %vm3558_vm2, %v4890_v63, 0.0  ;;  %v4891_v33 = vmul.f32 %v8425_v38, %v8425_v38 }
 0x4a9   :  { %v4789_v7 = vpop.xlane.xlu1 %4788  ;;  %4969 = vadd.xlane.f32.xlu1 %v4968_v25 }
 0x4aa   :  { %v8438_v36 = vsub.f32 %v4700_v23, %v4829_v60  ;;  %v4830_v17 = vmul.f32 0.03125, %v4789_v7  ;;  %v4892_v34 = vmul.f32 %v8432_v31, %v8432_v31  ;;  %v8664_v23 = vmax.f32 %v8230_v0, 0.0 }
 0x4ab   :  { %v4792_v55 = vpop.xlane.xlu0 %4791  ;;  %4966 = vadd.xlane.f32.xlu0 %v4965_v27  ;;  %v4971_v1 = vsel %vm3558_vm2, %v4891_v33, 0.0 }
 0x4ac   :  { %v8446_v21 = vsub.f32 %v4701_v43, %v4830_v17  ;;  %v4831_v50 = vmul.f32 0.03125, %v4792_v55  ;;  %v4974_v15 = vsel %vm3558_vm2, %v4892_v34, 0.0  ;;  %v4893_v2 = vmul.f32 %v8438_v36, %v8438_v36 }
 0x4ad   :  { %v4795_v9 = vpop.xlane.xlu1 %4794  ;;  %4975 = vadd.xlane.f32.xlu1 %v4974_v15 }
 0x4ae   :  { %v8453_v59 = vsub.f32 %v8664_v23, %v4831_v50  ;;  %v4832_v57 = vmul.f32 0.03125, %v4795_v9  ;;  %v4894_v39 = vmul.f32 %v8446_v21, %v8446_v21  ;;  %v4977_v0 = vsel %vm3558_vm2, %v4893_v2, 0.0 }
 0x4af   :  { %4972 = vadd.xlane.f32.xlu0 %v4971_v1  ;;  %v4798_v43 = vpop.xlane.xlu0 %4797 }
 0x4b0   :  { %v8460_v3 = vsub.f32 %v8665_v53, %v4832_v57  ;;  %v4833_v48 = vmul.f32 0.03125, %v4798_v43  ;;  %v4980_v13 = vsel %vm3558_vm2, %v4894_v39, 0.0  ;;  %v4895_v41 = vmul.f32 %v8453_v59, %v8453_v59 }
 0x4b1   :  { %4981 = vadd.xlane.f32.xlu1 %v4980_v13  ;;  %v4801_v51 = vpop.xlane.xlu1 %4800  ;;  %v8487_v13 = vld [vmem:[%s8642_s8] ss:$0 sm:$0xff]  ;;  %s7005_s8 = smov [#allocation2]  }
 0x4b2   :  { %v8466_v12 = vsub.f32 %v8666_v18, %v4833_v48  ;;  %v4834_v11 = vmul.f32 0.03125, %v4801_v51  ;;  %v4896_v14 = vmul.f32 %v8460_v3, %v8460_v3  ;;  %v4983_v28 = vsel %vm3558_vm2, %v4895_v41, 0.0 }
 0x4b3   :  { %4978 = vadd.xlane.f32.xlu0 %v4977_v0 }
 0x4b4   :  { %v8474_v32 = vsub.f32 %v4705_v26, %v4834_v11  ;;  %v4986_v63 = vsel %vm3558_vm2, %v4896_v14, 0.0  ;;  %v4897_v20 = vmul.f32 %v8466_v12, %v8466_v12  ;;  %v8493_v14 = vld [vmem:[%s8643_s9] ss:$0 sm:$0xff]  ;;  %s5238_s9 = sshll.u32 %s7005_s8, 4  ;;  %s5239_s9 = int_to_ptr.vmem [resolvable:$true] %s5238_s9 }
 0x4b5   :  { %4987 = vadd.xlane.f32.xlu1 %v4986_v63  ;;  %s6980_s2 = scalar_lea.vmem %s5239_s9, 4096  ;;  %p6985_p1 = scmp.lt.s32.totalorder %s5239_s9, %s5239_s9 }
 0x4b6   :  { %v4898_v22 = vmul.f32 %v8474_v32, %v8474_v32  ;;  %v4989_v25 = vsel %vm3558_vm2, %v4897_v20, 0.0  ;;  %p6981_p0 = scmp.ne.s32.totalorder %s5239_s9, %s6980_s2  ;;  %p6986_p2 = scmp.lt.s32.totalorder %s6980_s2, %s6980_s2 }
 0x4b7   :  { %4984 = vadd.xlane.f32.xlu0 %v4983_v28 }
 0x4b8   :  { %v4992_v60 = vsel %vm3558_vm2, %v4898_v22, 0.0  ;;  %p6987_p3 = por %p6986_p2, %p6985_p1 }
 0x4b9   :  { %4993 = vadd.xlane.f32.xlu1 %v4992_v60 }
 0x4ba   :  { %p6988_p4 = pnand %p6987_p3, %p6981_p0 }
 0x4bb   :  { %4990 = vadd.xlane.f32.xlu0 %v4989_v25 }
 0x508   :  { %v4904_v19 = vpop.xlane.xlu1 %4903 }
 0x509   :  { %v4996_v26 = vmul.f32 0.03125, %v4904_v19 }
 0x50b   :  { %v5028_v7 = vadd.f32 1e-05, %v4996_v26 }
 0x50c   :  { %v4910_v27 = vpop.xlane.xlu1 %4909  ;;  %v4901_v17 = vpop.xlane.xlu0 %4900 }
 0x50d   :  { %6884 = vrsqrt.f32 %v5028_v7  ;;  %v4998_v34 = vmul.f32 0.03125, %v4910_v27  ;;  %v4995_v33 = vmul.f32 0.03125, %v4901_v17 }
 0x50f   :  { %v5030_v55 = vadd.f32 1e-05, %v4998_v34  ;;  %v5027_v50 = vadd.f32 1e-05, %v4995_v33 }
 0x510   :  { %v4907_v15 = vpop.xlane.xlu0 %4906 }
 0x511   :  { %6886 = vrsqrt.f32 %v5030_v55  ;;  %v4997_v9 = vmul.f32 0.03125, %v4907_v15 }
 0x512   :  { %6888 = vrsqrt.f32 %v5027_v50  ;;  %v4916_v2 = vpop.xlane.xlu1 %4915 }
 0x513   :  { %v5029_v23 = vadd.f32 1e-05, %v4997_v9  ;;  %v5000_v57 = vmul.f32 0.03125, %v4916_v2 }
 0x514   :  { %v4913_v1 = vpop.xlane.xlu0 %4912 }
 0x515   :  { %6890 = vrsqrt.f32 %v5029_v23  ;;  %v5032_v39 = vadd.f32 1e-05, %v5000_v57  ;;  %v4999_v43 = vmul.f32 0.03125, %v4913_v1 }
 0x516   :  { %v4922_v53 = vpop.xlane.xlu1 %4921 }
 0x517   :  { %v6885_v48 = vpop.eup %6884  ;;  %6892 = vrsqrt.f32 %v5032_v39  ;;  %v5031_v51 = vadd.f32 1e-05, %v4999_v43  ;;  %v5002_v0 = vmul.f32 0.03125, %v4922_v53 }
 0x518   :  { %v5092_v18 = vmul.f32 %v6885_v48, %v8262_v29  ;;  %v4919_v11 = vpop.xlane.xlu0 %4918 }
 0x519   :  { %6894 = vrsqrt.f32 %v5031_v51  ;;  %v5034_v41 = vadd.f32 1e-05, %v5002_v0  ;;  %v5001_v63 = vmul.f32 0.03125, %v4919_v11 }
 0x51a   :  { %v5131_v28 = vmul.f32 %v8487_v13, %v5092_v18  ;;  %v4928_v22 = vpop.xlane.xlu1 %4927 }
 0x51b   :  { %v6887_v20 = vpop.eup %6886  ;;  %6896 = vrsqrt.f32 %v5034_v41  ;;  %v5033_v60 = vadd.f32 1e-05, %v5001_v63  ;;  %v5004_v25 = vmul.f32 0.03125, %v4928_v22 }
 0x51c   :  { %v6889_v19 = vpop.eup %6888  ;;  %v5170_v26 = vadd.f32 %v8493_v14, %v5131_v28  ;;  %v5094_v29 = vmul.f32 %v6887_v20, %v8266_v40  ;;  %v4925_v7 = vpop.xlane.xlu0 %4924 }
 0x51d   :  { %v5091_v27 = vmul.f32 %v6889_v19, %v8272_v8  ;;  %6898 = vrsqrt.f32 %v5033_v60  ;;  %v5036_v17 = vadd.f32 1e-05, %v5004_v25  ;;  %v5003_v34 = vmul.f32 0.03125, %v4925_v7 }
 0x51e   :  { %5202 = vst.msk [vmem:[#allocation2 + $0x8] sm:$0xff] %vm3558_vm2, %v5170_v26  ;;  %v5133_v33 = vmul.f32 %v8487_v13, %v5094_v29  ;;  %v4934_v55 = vpop.xlane.xlu1 %4933 }
 0x51f   :  { %v6891_v50 = vpop.eup %6890  ;;  %v5130_v15 = vmul.f32 %v8487_v13, %v5091_v27  ;;  %6900 = vrsqrt.f32 %v5036_v17  ;;  %v5035_v9 = vadd.f32 1e-05, %v5003_v34  ;;  %v5006_v2 = vmul.f32 0.03125, %v4934_v55 }
 0x520   :  { %v5172_v23 = vadd.f32 %v8493_v14, %v5133_v33  ;;  %v5093_v40 = vmul.f32 %v6891_v50, %v8279_v42  ;;  %v4931_v57 = vpop.xlane.xlu0 %4930 }
 0x521   :  { %v6893_v8 = vpop.eup %6892  ;;  %v5169_v1 = vadd.f32 %v8493_v14, %v5130_v15  ;;  %6902 = vrsqrt.f32 %v5035_v9  ;;  %v5038_v39 = vadd.f32 1e-05, %v5006_v2  ;;  %v5005_v43 = vmul.f32 0.03125, %v4931_v57 }
 0x522   :  { %5204 = vst.msk [vmem:[#allocation2 + $0x18] sm:$0xff] %vm3558_vm2, %v5172_v23  ;;  %v5132_v53 = vmul.f32 %v8487_v13, %v5093_v40  ;;  %v5096_v48 = vmul.f32 %v6893_v8, %v8293_v61  ;;  %v4940_v51 = vpop.xlane.xlu1 %4939 }
 0x523   :  { %v6895_v0 = vpop.eup %6894  ;;  %5201 = vst.msk [vmem:[#allocation2] sm:$0xff] %vm3558_vm2, %v5169_v1  ;;  %6904 = vrsqrt.f32 %v5038_v39  ;;  %v5037_v18 = vadd.f32 1e-05, %v5005_v43  ;;  %v5008_v42 = vmul.f32 0.03125, %v4940_v51 }
 0x524   :  { %v5171_v11 = vadd.f32 %v8493_v14, %v5132_v53  ;;  %v5135_v41 = vmul.f32 %v8487_v13, %v5096_v48  ;;  %v5095_v63 = vmul.f32 %v6895_v0, %v8286_v54  ;;  %v4937_v28 = vpop.xlane.xlu0 %4936 }
 0x525   :  { %v6897_v22 = vpop.eup %6896  ;;  %6906 = vrsqrt.f32 %v5037_v18  ;;  %v5040_v20 = vadd.f32 1e-05, %v5008_v42  ;;  %v5007_v60 = vmul.f32 0.03125, %v4937_v28 }
 0x526   :  { %5203 = vst.msk [vmem:[#allocation2 + $0x10] sm:$0xff] %vm3558_vm2, %v5171_v11  ;;  %v5174_v61 = vadd.f32 %v8493_v14, %v5135_v41  ;;  %v5134_v25 = vmul.f32 %v8487_v13, %v5095_v63  ;;  %v5098_v19 = vmul.f32 %v6897_v22, %v8306_v62  ;;  %v4946_v26 = vpop.xlane.xlu1 %4945 }
 0x527   :  { %v6899_v29 = vpop.eup %6898  ;;  %6908 = vrsqrt.f32 %v5040_v20  ;;  %v5039_v7 = vadd.f32 1e-05, %v5007_v60  ;;  %v5010_v27 = vmul.f32 0.03125, %v4946_v26 }
 0x528   :  { %5206 = vst.msk [vmem:[#allocation2 + $0x28] sm:$0xff] %vm3558_vm2, %v5174_v61  ;;  %v5173_v54 = vadd.f32 %v8493_v14, %v5134_v25  ;;  %v5137_v17 = vmul.f32 %v8487_v13, %v5098_v19  ;;  %v5097_v34 = vmul.f32 %v6899_v29, %v8298_v6  ;;  %v4943_v33 = vpop.xlane.xlu0 %4942 }
 0x529   :  { %v6901_v55 = vpop.eup %6900  ;;  %6910 = vrsqrt.f32 %v5039_v7  ;;  %v5042_v50 = vadd.f32 1e-05, %v5010_v27  ;;  %v5009_v15 = vmul.f32 0.03125, %v4943_v33 }
 0x52a   :  { %5205 = vst.msk [vmem:[#allocation2 + $0x20] sm:$0xff] %vm3558_vm2, %v5173_v54  ;;  %v5176_v62 = vadd.f32 %v8493_v14, %v5137_v17  ;;  %v5136_v9 = vmul.f32 %v8487_v13, %v5097_v34  ;;  %v5100_v2 = vmul.f32 %v6901_v55, %v8320_v47  ;;  %v4952_v23 = vpop.xlane.xlu1 %4951 }
 0x52b   :  { %v6903_v40 = vpop.eup %6902  ;;  %6912 = vrsqrt.f32 %v5042_v50  ;;  %v5041_v57 = vadd.f32 1e-05, %v5009_v15  ;;  %v5012_v8 = vmul.f32 0.03125, %v4952_v23 }
 0x52c   :  { %5208 = vst.msk [vmem:[#allocation2 + $0x38] sm:$0xff] %vm3558_vm2, %v5176_v62  ;;  %v5175_v6 = vadd.f32 %v8493_v14, %v5136_v9  ;;  %v5139_v1 = vmul.f32 %v8487_v13, %v5100_v2  ;;  %v5099_v39 = vmul.f32 %v6903_v40, %v8313_v44  ;;  %v4949_v43 = vpop.xlane.xlu0 %4948 }
 0x52d   :  { %v6905_v53 = vpop.eup %6904  ;;  %6914 = vrsqrt.f32 %v5041_v57  ;;  %v5044_v48 = vadd.f32 1e-05, %v5012_v8  ;;  %v5011_v51 = vmul.f32 0.03125, %v4949_v43 }
 0x52e   :  { %5207 = vst.msk [vmem:[#allocation2 + $0x30] sm:$0xff] %vm3558_vm2, %v5175_v6  ;;  %v5178_v47 = vadd.f32 %v8493_v14, %v5139_v1  ;;  %v5138_v0 = vmul.f32 %v8487_v13, %v5099_v39  ;;  %v5102_v18 = vmul.f32 %v6905_v53, %v8334_v24  ;;  %v4958_v42 = vpop.xlane.xlu1 %4957 }
 0x52f   :  { %v6907_v11 = vpop.eup %6906  ;;  %6916 = vrsqrt.f32 %v5044_v48  ;;  %v5043_v41 = vadd.f32 1e-05, %v5011_v51  ;;  %v5014_v63 = vmul.f32 0.03125, %v4958_v42 }
 0x530   :  { %5210 = vst.msk [vmem:[#allocation2 + $0x48] sm:$0xff] %vm3558_vm2, %v5178_v47  ;;  %v5177_v44 = vadd.f32 %v8493_v14, %v5138_v0  ;;  %v5141_v28 = vmul.f32 %v8487_v13, %v5102_v18  ;;  %v5101_v22 = vmul.f32 %v6907_v11, %v8326_v56  ;;  %v4955_v20 = vpop.xlane.xlu0 %4954 }
 0x531   :  { %v6909_v60 = vpop.eup %6908  ;;  %6918 = vrsqrt.f32 %v5043_v41  ;;  %v5046_v61 = vadd.f32 1e-05, %v5014_v63  ;;  %v5013_v25 = vmul.f32 0.03125, %v4955_v20 }
 0x532   :  { %5209 = vst.msk [vmem:[#allocation2 + $0x40] sm:$0xff] %vm3558_vm2, %v5177_v44  ;;  %v5180_v24 = vadd.f32 %v8493_v14, %v5141_v28  ;;  %v5140_v19 = vmul.f32 %v8487_v13, %v5101_v22  ;;  %v5104_v26 = vmul.f32 %v6909_v60, %v8348_v45  ;;  %v4964_v29 = vpop.xlane.xlu1 %4963 }
 0x533   :  { %v6911_v7 = vpop.eup %6910  ;;  %6920 = vrsqrt.f32 %v5046_v61  ;;  %v5045_v27 = vadd.f32 1e-05, %v5013_v25  ;;  %v5016_v54 = vmul.f32 0.03125, %v4964_v29 }
 0x534   :  { %5212 = vst.msk [vmem:[#allocation2 + $0x58] sm:$0xff] %vm3558_vm2, %v5180_v24  ;;  %v5179_v56 = vadd.f32 %v8493_v14, %v5140_v19  ;;  %v5143_v17 = vmul.f32 %v8487_v13, %v5104_v26  ;;  %v5103_v34 = vmul.f32 %v6911_v7, %v8341_v16  ;;  %v4961_v33 = vpop.xlane.xlu0 %4960 }
 0x535   :  { %v6913_v55 = vpop.eup %6912  ;;  %6922 = vrsqrt.f32 %v5045_v27  ;;  %v5048_v50 = vadd.f32 1e-05, %v5016_v54  ;;  %v5015_v15 = vmul.f32 0.03125, %v4961_v33 }
 0x536   :  { %5211 = vst.msk [vmem:[#allocation2 + $0x50] sm:$0xff] %vm3558_vm2, %v5179_v56  ;;  %v5182_v45 = vadd.f32 %v8493_v14, %v5143_v17  ;;  %v5142_v62 = vmul.f32 %v8487_v13, %v5103_v34  ;;  %v5106_v9 = vmul.f32 %v6913_v55, %v8362_v5  ;;  %v4970_v2 = vpop.xlane.xlu1 %4969 }
 0x537   :  { %v6915_v23 = vpop.eup %6914  ;;  %6924 = vrsqrt.f32 %v5048_v50  ;;  %v5047_v40 = vadd.f32 1e-05, %v5015_v15  ;;  %v5018_v57 = vmul.f32 0.03125, %v4970_v2 }
 0x538   :  { %5214 = vst.msk [vmem:[#allocation2 + $0x68] sm:$0xff] %vm3558_vm2, %v5182_v45  ;;  %v5181_v16 = vadd.f32 %v8493_v14, %v5142_v62  ;;  %v5145_v8 = vmul.f32 %v8487_v13, %v5106_v9  ;;  %v5105_v6 = vmul.f32 %v6915_v23, %v8354_v4  ;;  %v4967_v1 = vpop.xlane.xlu0 %4966 }
 0x539   :  { %v6917_v39 = vpop.eup %6916  ;;  %6926 = vrsqrt.f32 %v5047_v40  ;;  %v5050_v43 = vadd.f32 1e-05, %v5018_v57  ;;  %v5017_v53 = vmul.f32 0.03125, %v4967_v1 }
 0x53a   :  { %5213 = vst.msk [vmem:[#allocation2 + $0x60] sm:$0xff] %vm3558_vm2, %v5181_v16  ;;  %v5184_v5 = vadd.f32 %v8493_v14, %v5145_v8  ;;  %v5144_v48 = vmul.f32 %v8487_v13, %v5105_v6  ;;  %v5108_v51 = vmul.f32 %v6917_v39, %v8376_v37  ;;  %v4976_v47 = vpop.xlane.xlu1 %4975 }
 0x53b   :  { %v6919_v0 = vpop.eup %6918  ;;  %6928 = vrsqrt.f32 %v5050_v43  ;;  %v5049_v18 = vadd.f32 1e-05, %v5017_v53  ;;  %v5020_v42 = vmul.f32 0.03125, %v4976_v47 }
 0x53c   :  { %5216 = vst.msk [vmem:[#allocation2 + $0x78] sm:$0xff] %vm3558_vm2, %v5184_v5  ;;  %v5183_v4 = vadd.f32 %v8493_v14, %v5144_v48  ;;  %v5147_v11 = vmul.f32 %v8487_v13, %v5108_v51  ;;  %v5107_v41 = vmul.f32 %v6919_v0, %v8369_v30  ;;  %v4973_v63 = vpop.xlane.xlu0 %4972 }
 0x53d   :  { %v6921_v44 = vpop.eup %6920  ;;  %6930 = vrsqrt.f32 %v5049_v18  ;;  %v5052_v28 = vadd.f32 1e-05, %v5020_v42  ;;  %v5019_v22 = vmul.f32 0.03125, %v4973_v63 }
 0x53e   :  { %5215 = vst.msk [vmem:[#allocation2 + $0x70] sm:$0xff] %vm3558_vm2, %v5183_v4  ;;  %v5186_v37 = vadd.f32 %v8493_v14, %v5147_v11  ;;  %v5146_v20 = vmul.f32 %v8487_v13, %v5107_v41  ;;  %v5110_v60 = vmul.f32 %v6921_v44, %v8390_v10  ;;  %v4982_v61 = vpop.xlane.xlu1 %4981 }
 0x53f   :  { %v6923_v25 = vpop.eup %6922  ;;  %6932 = vrsqrt.f32 %v5052_v28  ;;  %v5051_v24 = vadd.f32 1e-05, %v5019_v22  ;;  %v5022_v19 = vmul.f32 0.03125, %v4982_v61 }
 0x540   :  { %5218 = vst.msk [vmem:[#allocation2 + $0x88] sm:$0xff] %vm3558_vm2, %v5186_v37  ;;  %v5185_v30 = vadd.f32 %v8493_v14, %v5146_v20  ;;  %v5149_v26 = vmul.f32 %v8487_v13, %v5110_v60  ;;  %v5109_v29 = vmul.f32 %v6923_v25, %v8382_v52  ;;  %v4979_v7 = vpop.xlane.xlu0 %4978 }
 0x541   :  { %v6925_v27 = vpop.eup %6924  ;;  %6934 = vrsqrt.f32 %v5051_v24  ;;  %v5054_v54 = vadd.f32 1e-05, %v5022_v19  ;;  %v5021_v56 = vmul.f32 0.03125, %v4979_v7 }
 0x542   :  { %5217 = vst.msk [vmem:[#allocation2 + $0x80] sm:$0xff] %vm3558_vm2, %v5185_v30  ;;  %v5188_v10 = vadd.f32 %v8493_v14, %v5149_v26  ;;  %v5148_v17 = vmul.f32 %v8487_v13, %v5109_v29  ;;  %v5112_v34 = vmul.f32 %v6925_v27, %v8404_v49  ;;  %v4988_v33 = vpop.xlane.xlu1 %4987 }
 0x543   :  { %v6927_v55 = vpop.eup %6926  ;;  %6936 = vrsqrt.f32 %v5054_v54  ;;  %v5053_v50 = vadd.f32 1e-05, %v5021_v56  ;;  %v5024_v15 = vmul.f32 0.03125, %v4988_v33 }
 0x544   :  { %5220 = vst.msk [vmem:[#allocation2 + $0x98] sm:$0xff] %vm3558_vm2, %v5188_v10  ;;  %v5187_v52 = vadd.f32 %v8493_v14, %v5148_v17  ;;  %v5151_v45 = vmul.f32 %v8487_v13, %v5112_v34  ;;  %v5111_v62 = vmul.f32 %v6927_v55, %v8397_v46  ;;  %v4985_v9 = vpop.xlane.xlu0 %4984 }
 0x545   :  { %v6929_v2 = vpop.eup %6928  ;;  %6938 = vrsqrt.f32 %v5053_v50  ;;  %v5056_v23 = vadd.f32 1e-05, %v5024_v15  ;;  %v5023_v40 = vmul.f32 0.03125, %v4985_v9 }
 0x546   :  { %5219 = vst.msk [vmem:[#allocation2 + $0x90] sm:$0xff] %vm3558_vm2, %v5187_v52  ;;  %v5190_v49 = vadd.f32 %v8493_v14, %v5151_v45  ;;  %v5150_v57 = vmul.f32 %v8487_v13, %v5111_v62  ;;  %v5114_v16 = vmul.f32 %v6929_v2, %v8418_v35  ;;  %v4994_v8 = vpop.xlane.xlu1 %4993 }
 0x547   :  { %v6931_v6 = vpop.eup %6930  ;;  %6940 = vrsqrt.f32 %v5056_v23  ;;  %v5055_v1 = vadd.f32 1e-05, %v5023_v40  ;;  %v5026_v39 = vmul.f32 0.03125, %v4994_v8 }
 0x548   :  { %5222 = vst.msk [vmem:[#allocation2 + $0xa8] sm:$0xff] %vm3558_vm2, %v5190_v49  ;;  %v5189_v46 = vadd.f32 %v8493_v14, %v5150_v57  ;;  %v5153_v43 = vmul.f32 %v8487_v13, %v5114_v16  ;;  %v5113_v53 = vmul.f32 %v6931_v6, %v8410_v58  ;;  %v4991_v5 = vpop.xlane.xlu0 %4990 }
 0x549   :  { %v6933_v48 = vpop.eup %6932  ;;  %6942 = vrsqrt.f32 %v5055_v1  ;;  %v5058_v51 = vadd.f32 1e-05, %v5026_v39  ;;  %v5025_v47 = vmul.f32 0.03125, %v4991_v5 }
 0x54a   :  { %5221 = vst.msk [vmem:[#allocation2 + $0xa0] sm:$0xff] %vm3558_vm2, %v5189_v46  ;;  %v5192_v35 = vadd.f32 %v8493_v14, %v5153_v43  ;;  %v5152_v0 = vmul.f32 %v8487_v13, %v5113_v53  ;;  %v5116_v18 = vmul.f32 %v6933_v48, %v8432_v31 }
 0x54b   :  { %v6935_v42 = vpop.eup %6934  ;;  %6944 = vrsqrt.f32 %v5058_v51  ;;  %v5057_v4 = vadd.f32 1e-05, %v5025_v47 }
 0x54c   :  { %5224 = vst.msk [vmem:[#allocation2 + $0xb8] sm:$0xff] %vm3558_vm2, %v5192_v35  ;;  %v5191_v58 = vadd.f32 %v8493_v14, %v5152_v0  ;;  %v5155_v11 = vmul.f32 %v8487_v13, %v5116_v18  ;;  %v5115_v41 = vmul.f32 %v6935_v42, %v8425_v38 }
 0x54d   :  { %v6937_v63 = vpop.eup %6936  ;;  %6946 = vrsqrt.f32 %v5057_v4 }
 0x54e   :  { %5223 = vst.msk [vmem:[#allocation2 + $0xb0] sm:$0xff] %vm3558_vm2, %v5191_v58  ;;  %v5194_v44 = vadd.f32 %v8493_v14, %v5155_v11  ;;  %v5154_v28 = vmul.f32 %v8487_v13, %v5115_v41  ;;  %v5118_v31 = vmul.f32 %v6937_v63, %v8446_v21 }
 0x54f   :  { %v6939_v22 = vpop.eup %6938 }
 0x550   :  { %5226 = vst.msk [vmem:[#allocation2 + $0xc8] sm:$0xff] %vm3558_vm2, %v5194_v44  ;;  %v5193_v37 = vadd.f32 %v8493_v14, %v5154_v28  ;;  %v5157_v20 = vmul.f32 %v8487_v13, %v5118_v31  ;;  %v5117_v60 = vmul.f32 %v6939_v22, %v8438_v36 }
 0x551   :  { %v6941_v38 = vpop.eup %6940 }
 0x552   :  { %5225 = vst.msk [vmem:[#allocation2 + $0xc0] sm:$0xff] %vm3558_vm2, %v5193_v37  ;;  %v5196_v61 = vadd.f32 %v8493_v14, %v5157_v20  ;;  %v5156_v25 = vmul.f32 %v8487_v13, %v5117_v60  ;;  %v5120_v24 = vmul.f32 %v6941_v38, %v8460_v3 }
 0x553   :  { %v6943_v19 = vpop.eup %6942 }
 0x554   :  { %5228 = vst.msk [vmem:[#allocation2 + $0xd8] sm:$0xff] %vm3558_vm2, %v5196_v61  ;;  %v5195_v21 = vadd.f32 %v8493_v14, %v5156_v25  ;;  %v5159_v30 = vmul.f32 %v8487_v13, %v5120_v24  ;;  %v5119_v26 = vmul.f32 %v6943_v19, %v8453_v59 }
 0x555   :  { %v6945_v29 = vpop.eup %6944 }
 0x556   :  { %5227 = vst.msk [vmem:[#allocation2 + $0xd0] sm:$0xff] %vm3558_vm2, %v5195_v21  ;;  %v5198_v36 = vadd.f32 %v8493_v14, %v5159_v30  ;;  %v5158_v7 = vmul.f32 %v8487_v13, %v5119_v26  ;;  %v5122_v27 = vmul.f32 %v6945_v29, %v8474_v32 }
 0x557   :  { %v6947_v54 = vpop.eup %6946 }
 0x558   :  { %5230 = vst.msk [vmem:[#allocation2 + $0xe8] sm:$0xff] %vm3558_vm2, %v5198_v36  ;;  %v5197_v3 = vadd.f32 %v8493_v14, %v5158_v7  ;;  %v5161_v56 = vmul.f32 %v8487_v13, %v5122_v27  ;;  %v5121_v10 = vmul.f32 %v6947_v54, %v8466_v12 }
 0x55a   :  { %5229 = vst.msk [vmem:[#allocation2 + $0xe0] sm:$0xff] %vm3558_vm2, %v5197_v3  ;;  %v5200_v59 = vadd.f32 %v8493_v14, %v5161_v56  ;;  %v5160_v17 = vmul.f32 %v8487_v13, %v5121_v10 }
 0x55c   :  { %5232 = vst.msk [vmem:[#allocation2 + $0xf8] sm:$0xff] %vm3558_vm2, %v5200_v59  ;;  %v5199_v32 = vadd.f32 %v8493_v14, %v5160_v17 }
 0x55e   :  { %5231 = vst.msk [vmem:[#allocation2 + $0xf0] sm:$0xff] %vm3558_vm2, %v5199_v32 }
 0x55f   :  { %6991 = shalt.err (!%p6988_p4)
}
 0x560   :  { %s6992_s26 = scalar_lea.hbm %s8644_s10, 4096 }
 0x561   :  { %p6993_p5 = scmp.ne.s32.totalorder %s8644_s10, %s6992_s26  ;;  %p6996_p6 = scmp.lt.u32.totalorder %s6992_s26, %s8644_s10 }
 0x563   :  { %p6998_p7 = pnand %p6996_p6, %p6993_p5 }
 0x565   :  { %7001 = shalt.err (!%p6998_p7)
}
 0x566   :  { %s7006_s6 = smov 128   ;;  %s7007_s29 = smov 8  }
 0x567   :  { %5244 = dma.vmem_to_hbm [thread:$0]  %s5239_s9, 4096, %s8644_s10, [#allocation3], %s7006_s6, %s7006_s6, %s7007_s29  }
 0x568   :  { %7002 = dma.done.wait [#allocation3], 4096  }
 0x569   :  { %7003 = vsyncadd [#allocation3], 4294963200 }
 0x56a   :  { %5248 = vsyncpa [#allocation3], 1 }

</bundles_post_ra>
